<compile_context>
chip_gen: v5e
topology: v5e:2x2
jax: 0.10.0
libtpu: 0.0.40
codegen_flags: <defaults>
</compile_context>

<pallas_src>
import functools
import math

import jax
import jax.numpy as jnp
import numpy as np
from jax.experimental import pallas as pl
from jax.experimental.pallas import tpu as pltpu


INV_SQRT2 = 1.0 / math.sqrt(2.0)


def _gelu(x, approximate):
    if approximate:
        # tanh-approx GELU: the transcendental goes to the EUP (otherwise idle
        # in this kernel), freeing the VALU which is the binding unit here.
        c0 = jnp.asarray(0.7978845608028654, x.dtype)   # sqrt(2/pi)
        c1 = jnp.asarray(0.044715, x.dtype)
        return 0.5 * x * (1.0 + jnp.tanh(c0 * (x + c1 * x * x * x)))
    # Exact erf formulation (PyTorch nn.GELU default), evaluated in f32.
    xf = x.astype(jnp.float32)
    return (0.5 * xf * (1.0 + jax.lax.erf(xf * INV_SQRT2))).astype(x.dtype)


def _irffn_kernel(x_ref, w1_ref, b1_ref, wd_ref, bd_ref, w2_ref, b2_ref,
                  o_ref, *, H, W, TH, cdt, mdt, approx_gelu):
    """One grid step = one (batch, row-tile) pair.

    x_ref  : (Cin, S)  with S = (TH + 2) * W  -- row-halo'd, flattened spatial
    w1_ref : (Cexp, Cin)     b1_ref : (Cexp, 1)   (BN1 folded in)
    wd_ref : (3, 3, Cexp, 1) bd_ref : (Cexp, 1)   (BN2 folded in)
    w2_ref : (Cin, Cexp)     b2_ref : (Cin, 1)    (BN3 folded in)
    o_ref  : (Cin, SO) with SO = TH * W
    """
    S = (TH + 2) * W
    SO = TH * W
    t = pl.program_id(1)

    xin = x_ref[...]                                            # (Cin, S)

    # ---- conv1: 1x1 pointwise (+ folded BN1), f32 accumulation on the MXU ---
    h1 = jnp.dot(w1_ref[...], xin.astype(mdt),
                 preferred_element_type=jnp.float32) + b1_ref[...]
    h1 = _gelu(h1.astype(cdt), approx_gelu)                     # (Cexp, S)

    # Zero h1 on halo rows outside the image: the depthwise conv must see the
    # zero padding, not GELU(BN(bias)), beyond the border.
    # TODO(synk): only the t==0 / t==n_t-1 tiles have such rows; this select
    # could be gated on those tiles (~1 VALU op/elem saved on interior tiles).
    p = jax.lax.broadcasted_iota(jnp.int32, (1, S), 1)          # frame lane idx
    g = p + t * SO                                              # padded flat idx
    h1 = jnp.where((g >= W) & (g < (H + 1) * W), h1, 0.0)

    # ---- dwconv: 3x3 depthwise (+ folded BN2) on the VPU/XLU ----------------
    # All nine taps are whole-frame rolls (XLU slot has slack): the two
    # column-masked horizontal shifts are hoisted out of the kh loop, the
    # vertical +/-W offsets are folded into the roll shift, and a single
    # interior slice is taken at the end (instead of six unaligned row-window
    # realignment copies).  Wrap-around from the cyclic rolls only lands on
    # halo positions that the interior slice never reads.
    col = p % W
    not_first = col != 0                 # dx = -1 invalid in column 0
    not_last = col != (W - 1)            # dx = +1 invalid in column W-1
    left = jnp.where(not_first, pltpu.roll(h1, 1, axis=1), 0.0)
    right = jnp.where(not_last, pltpu.roll(h1, S - 1, axis=1), 0.0)

    acc = None
    for kh in range(3):                  # kh = 0/1/2  <->  dy = -1/0/+1
        shift = ((1 - kh) * W) % S       # roll so tap[q + dy*W] lands at q
        for kw, tap in ((0, left), (1, h1), (2, right)):
            v = tap if shift == 0 else pltpu.roll(tap, shift, axis=1)
            term = v * wd_ref[kh, kw].astype(cdt)               # (Cexp,1) bcast
            acc = term if acc is None else acc + term           # first tap inits
    h2 = _gelu(acc[:, W:W + SO] + bd_ref[...].astype(cdt), approx_gelu)

    # ---- conv2: 1x1 pointwise (+ folded BN3), f32 accumulation on the MXU ---
    h3 = jnp.dot(w2_ref[...], h2.astype(mdt),
                 preferred_element_type=jnp.float32) + b2_ref[...]

    # ---- residual add (interior rows of the halo'd tile) + lane-dense store -
    res = xin[:, W:W + SO].astype(jnp.float32)
    o_ref[...] = (res + h3).astype(o_ref.dtype)


def _device_settings():
    """Generation-aware compute/matmul dtypes, VMEM tile budget and limit."""
    kind = ""
    try:
        kind = jax.devices()[0].device_kind.lower()
    except Exception:
        pass
    if "v5 lite" in kind or "v5e" in kind or "v5lite" in kind:
        # v5e: no bf16 VALU/EUP -> f32 VPU math, bf16 MXU operands, big VMEM.
        return dict(compute=jnp.float32, matmul=jnp.bfloat16,
                    budget=20 << 20, vmem_limit=96 << 20)
    if "v6" in kind:
        # v6e: bf16 VALU/EUP + native-bf16 MXU.
        return dict(compute=jnp.bfloat16, matmul=jnp.bfloat16,
                    budget=20 << 20, vmem_limit=96 << 20)
    if "v7" in kind or "7x" in kind:
        # v7x: half the VMEM -> smaller intermediate budget.
        return dict(compute=jnp.bfloat16, matmul=jnp.bfloat16,
                    budget=10 << 20, vmem_limit=48 << 20)
    # Unknown / older chips: conservative f32 everywhere.
    return dict(compute=jnp.float32, matmul=jnp.float32,
                budget=8 << 20, vmem_limit=32 << 20)


def _pick_tile_rows(H, W, Cexp, itemsize, budget_bytes, prefer_split):
    """Pick a row tile TH (divisor of H) with TH*W a multiple of 128 (legal,
    lane-dense stores) whose Cexp working set fits `budget_bytes`.  If no such
    tile exists, fall back to the whole image as one tile (output block ==
    full flattened-spatial dim, always legal).  With prefer_split, prefer a
    split tile so both v7x TensorCores get work when B == 1."""
    def footprint(th):
        # ~8 live (Cexp, (th+2)*W) temporaries in the depthwise stage.
        return 8 * (th + 2) * W * Cexp * itemsize

    divisors = [d for d in range(1, H + 1) if H % d == 0]
    aligned = [d for d in divisors
               if (d * W) % 128 == 0 and footprint(d) <= budget_bytes]
    if prefer_split:
        split = [d for d in aligned if d < H]
        if split:
            return max(split)
    if aligned:
        return max(aligned)
    return H


def irffn_forward(x_nchw, params, *, tile_rows=None, approx_gelu=True,
                  compute_dtype=None, matmul_dtype=None):
    """x_nchw: (B, Cin, H, W). Returns (B, Cin, H, W)."""
    w1, b1, wd, bd, w2, b2 = params
    B, Cin, H, W = x_nchw.shape
    Cexp = w1.shape[0]

    cfg = _device_settings()
    cdt = compute_dtype if compute_dtype is not None else cfg["compute"]
    mdt = matmul_dtype if matmul_dtype is not None else cfg["matmul"]
    itemsize = 2 if cdt == jnp.bfloat16 else 4

    TH = tile_rows if tile_rows is not None else _pick_tile_rows(
        H, W, Cexp, itemsize, cfg["budget"], prefer_split=(B == 1))
    assert H % TH == 0, "row tile must divide H"
    n_t = H // TH
    S = (TH + 2) * W            # tile spatial extent incl. 1-row halo each side
    SO = TH * W                 # tile output spatial extent

    # Cast the grid-invariant weights once in the wrapper (also halves their
    # DMA when bf16 is selected).  Matmul biases stay f32 (added to f32 acc).
    w1c = w1.astype(mdt)
    w2c = w2.astype(mdt)
    b1c = b1.astype(jnp.float32)
    b2c = b2.astype(jnp.float32)
    wdc = wd.astype(cdt)
    bdc = bd.astype(cdt)

    # Row-halo'd, spatially-flattened input tiles, built once on the (small)
    # Cin-sized tensor so the kernel needs no dynamic lane slicing and the big
    # Cexp-sized intermediates never touch HBM.
    # TODO(synk): this halo-duplicating pad+stack could be replaced by one
    # resident padded (Cin, (H+2)*W) image per batch sliced in-kernel with
    # pl.ds(t*SO, S); kept wrapper-side (verified-correct path, duplication is
    # only on the small Cin-sized tensor).
    x_pad = jnp.pad(x_nchw, ((0, 0), (0, 0), (1, 1), (0, 0)))
    x_tiles = jnp.stack(
        [x_pad[:, :, t * TH:t * TH + TH + 2, :] for t in range(n_t)], axis=1)
    x_tiles = x_tiles.reshape(B, n_t, Cin, S)

    kernel = functools.partial(_irffn_kernel, H=H, W=W, TH=TH,
                               cdt=cdt, mdt=mdt, approx_gelu=approx_gelu)

    flops = int(B * H * W * (4 * Cin * Cexp + 30 * Cexp + 2 * Cin))
    transcendentals = int(2 * B * H * W * Cexp)
    bytes_accessed = int(
        x_tiles.size * x_tiles.dtype.itemsize
        + B * Cin * H * W * np.dtype(x_nchw.dtype).itemsize
        + sum(int(a.size) * a.dtype.itemsize
              for a in (w1c, b1c, wdc, bdc, w2c, b2c)))

    # TODO(synk): the six grid-invariant weight/bias blocks could take
    # pipeline_mode=pl.Buffered(1) to reclaim their second pipeline buffer
    # (VMEM headroom on v7x); left at the default pending buffer_count=1
    # support verification on this jax version.
    out_flat = pl.pallas_call(
        kernel,
        out_shape=jax.ShapeDtypeStruct((B, Cin, H * W), x_nchw.dtype),
        grid_spec=pltpu.PrefetchScalarGridSpec(
            num_scalar_prefetch=0,
            grid=(B, n_t),
            in_specs=[
                pl.BlockSpec((None, None, Cin, S), lambda b, t: (b, t, 0, 0)),
                pl.BlockSpec((Cexp, Cin), lambda b, t: (0, 0)),
                pl.BlockSpec((Cexp, 1), lambda b, t: (0, 0)),
                pl.BlockSpec((3, 3, Cexp, 1), lambda b, t: (0, 0, 0, 0)),
                pl.BlockSpec((Cexp, 1), lambda b, t: (0, 0)),
                pl.BlockSpec((Cin, Cexp), lambda b, t: (0, 0)),
                pl.BlockSpec((Cin, 1), lambda b, t: (0, 0)),
            ],
            out_specs=pl.BlockSpec((None, Cin, SO), lambda b, t: (b, 0, t)),
        ),
        compiler_params=pltpu.CompilerParams(
            dimension_semantics=("parallel", "parallel"),
            vmem_limit_bytes=cfg["vmem_limit"]),
        cost_estimate=pl.CostEstimate(
            flops=flops, transcendentals=transcendentals,
            bytes_accessed=bytes_accessed),
    )(x_tiles, w1c, b1c, wdc, bdc, w2c, b2c)

    # (B, Cin, H*W) -> (B, Cin, H, W): free row-major reshape, no transpose.
    return out_flat.reshape(B, Cin, H, W)


def make_params(key, in_channels, R, eps=1e-5):
    """Deterministic parameter init; BN (inference mode) folded into convs.

    Layouts expected by the kernel:
      w1: (Cexp, Cin)   b1: (Cexp, 1)
      wd: (3, 3, Cexp, 1)  bd: (Cexp, 1)
      w2: (Cin, Cexp)   b2: (Cin, 1)
    """
    Cin = in_channels
    Cexp = int(in_channels * R)
    ks = jax.random.split(key, 18)

    def bn(kg, kb, km, kv, c):
        gamma = 1.0 + 0.1 * jax.random.normal(kg, (c,), jnp.float32)
        beta = 0.1 * jax.random.normal(kb, (c,), jnp.float32)
        mean = 0.1 * jax.random.normal(km, (c,), jnp.float32)
        var = jax.random.uniform(kv, (c,), jnp.float32, 0.5, 1.5)
        scale = gamma / jnp.sqrt(var + eps)
        shift = beta - mean * scale
        return scale, shift

    # conv1: 1x1, Cin -> Cexp  (torch weight (Cexp, Cin, 1, 1) -> (Cexp, Cin))
    w1 = 0.2 * jax.random.normal(ks[0], (Cexp, Cin), jnp.float32)
    b1 = 0.1 * jax.random.normal(ks[1], (Cexp,), jnp.float32)
    s1, t1 = bn(ks[2], ks[3], ks[4], ks[5], Cexp)
    w1f = w1 * s1[:, None]
    b1f = (b1 * s1 + t1)[:, None]

    # dwconv: 3x3 depthwise (torch (Cexp, 1, 3, 3) -> (3, 3, Cexp, 1))
    wd = 0.2 * jax.random.normal(ks[6], (3, 3, Cexp), jnp.float32)
    bd = 0.1 * jax.random.normal(ks[7], (Cexp,), jnp.float32)
    s2, t2 = bn(ks[8], ks[9], ks[10], ks[11], Cexp)
    wdf = (wd * s2[None, None, :])[..., None]
    bdf = (bd * s2 + t2)[:, None]

    # conv2: 1x1, Cexp -> Cin  (torch weight (Cin, Cexp, 1, 1) -> (Cin, Cexp))
    w2 = 0.2 * jax.random.normal(ks[12], (Cin, Cexp), jnp.float32)
    b2 = 0.1 * jax.random.normal(ks[13], (Cin,), jnp.float32)
    s3, t3 = bn(ks[14], ks[15], ks[16], ks[17], Cin)
    w2f = w2 * s3[:, None]
    b2f = (b2 * s3 + t3)[:, None]

    return (w1f, b1f, wdf, bdf, w2f, b2f)


def irffn_reference(x_nchw, params, approx_gelu=True):
    """Pure-JAX (XLA) reference for validation (full f32, HIGHEST precision)."""
    w1, b1, wd, bd, w2, b2 = params
    Cexp = w1.shape[0]
    hi = jax.lax.Precision.HIGHEST
    x = jnp.transpose(x_nchw, (0, 2, 3, 1))                    # NHWC
    h = _gelu(jnp.einsum('bhwc,ec->bhwe', x, w1, precision=hi) + b1[:, 0],
              approx_gelu)
    h2 = jax.lax.conv_general_dilated(
        h, wd[:, :, :, 0][:, :, None, :], window_strides=(1, 1),
        padding=((1, 1), (1, 1)),
        dimension_numbers=('NHWC', 'HWIO', 'NHWC'),
        feature_group_count=Cexp, precision=hi)
    h2 = _gelu(h2 + bd[:, 0], approx_gelu)
    h3 = jnp.einsum('bhwe,ce->bhwc', h2, w2, precision=hi) + b2[:, 0]
    return jnp.transpose(x + h3, (0, 3, 1, 2))


if __name__ == "__main__":
    B, Cin, H, W = 2, 4, 16, 16
    R = 4

    key = jax.random.PRNGKey(0)
    kx, kp = jax.random.split(key)
    x = jax.random.normal(kx, (B, Cin, H, W), jnp.float32)
    params = make_params(kp, Cin, R)

    # 1) Strict-numerics path: f32 everywhere, exact-erf GELU (PyTorch default),
    #    forced 8-row tiles so the multi-tile halo / boundary masking runs.
    out_exact = jax.block_until_ready(
        irffn_forward(x, params, tile_rows=8, approx_gelu=False,
                      compute_dtype=jnp.float32, matmul_dtype=jnp.float32))
    ref_exact = jax.block_until_ready(
        irffn_reference(x, params, approx_gelu=False))
    np.testing.assert_allclose(np.asarray(out_exact), np.asarray(ref_exact),
                               rtol=1e-4, atol=1e-4)

    # 2) Fast path: device-default dtypes (bf16 on v6e/v7x), tanh GELU,
    #    auto-picked lane-aligned tiling.
    out_fast = jax.block_until_ready(irffn_forward(x, params))
    ref_fast = jax.block_until_ready(
        irffn_reference(x, params, approx_gelu=True))
    np.testing.assert_allclose(np.asarray(out_fast), np.asarray(ref_fast),
                               rtol=3e-2, atol=3e-2)

    print("KERNEL_OK")
</pallas_src>

<mosaic_0001>
module attributes {stable_mosaic.version = 11 : i64} {
  func.func @_irffn_kernel(%arg0: i32, %arg1: i32, %arg2: memref<1x1x4x160xf32, #tpu.memory_space<vmem>>, %arg3: memref<16x4xf32, #tpu.memory_space<vmem>>, %arg4: memref<16x1xf32, #tpu.memory_space<vmem>>, %arg5: memref<3x3x16x1xf32, #tpu.memory_space<vmem>>, %arg6: memref<16x1xf32, #tpu.memory_space<vmem>>, %arg7: memref<4x16xf32, #tpu.memory_space<vmem>>, %arg8: memref<4x1xf32, #tpu.memory_space<vmem>>, %arg9: memref<1x4x128xf32, #tpu.memory_space<vmem>>) attributes {dimension_semantics = [#tpu.dimension_semantics<parallel>, #tpu.dimension_semantics<parallel>], iteration_bounds = array<i64: 2, 2>, scalar_prefetch = 0 : i64, scratch_operands = 0 : i64, tpu.core_type = #tpu.core_type<tc>, window_params = [{transform_indices = @transform_0, window_bounds = array<i64: 1, 1, 4, 160>}, {pipeline_mode = #tpu.pipeline_mode<synchronous>, transform_indices = @transform_1, window_bounds = array<i64: 16, 4>}, {pipeline_mode = #tpu.pipeline_mode<synchronous>, transform_indices = @transform_2, window_bounds = array<i64: 16, 1>}, {pipeline_mode = #tpu.pipeline_mode<synchronous>, transform_indices = @transform_3, window_bounds = array<i64: 3, 3, 16, 1>}, {pipeline_mode = #tpu.pipeline_mode<synchronous>, transform_indices = @transform_4, window_bounds = array<i64: 16, 1>}, {pipeline_mode = #tpu.pipeline_mode<synchronous>, transform_indices = @transform_5, window_bounds = array<i64: 4, 16>}, {pipeline_mode = #tpu.pipeline_mode<synchronous>, transform_indices = @transform_6, window_bounds = array<i64: 4, 1>}, {transform_indices = @transform_7, window_bounds = array<i64: 1, 4, 128>}]} {
    %c0 = arith.constant 0 : index
    %c0_0 = arith.constant 0 : index
    %c0_1 = arith.constant 0 : index
    %c0_2 = arith.constant 0 : index
    %0 = vector.load %arg2[%c0, %c0_0, %c0_1, %c0_2] : memref<1x1x4x160xf32, #tpu.memory_space<vmem>>, vector<1x1x4x160xf32>
    %1 = vector.shape_cast %0 : vector<1x1x4x160xf32> to vector<4x160xf32>
    %c0_3 = arith.constant 0 : index
    %c0_4 = arith.constant 0 : index
    %2 = vector.load %arg3[%c0_3, %c0_4] : memref<16x4xf32, #tpu.memory_space<vmem>>, vector<16x4xf32>
    %cst = arith.constant dense<0.000000e+00> : vector<16x160xf32>
    %3 = tpu.matmul %2, %1, %cst {dimension_numbers = #tpu.dot_dimension_numbers<[1], [0], [0], [1], [0, 0, 1, 1], [], []>} : vector<16x4xf32>, vector<4x160xf32>, vector<16x160xf32> -> vector<16x160xf32>
    %c0_5 = arith.constant 0 : index
    %c0_6 = arith.constant 0 : index
    %4 = vector.load %arg4[%c0_5, %c0_6] : memref<16x1xf32, #tpu.memory_space<vmem>>, vector<16x1xf32>
    %5 = vector.broadcast %4 : vector<16x1xf32> to vector<16x160xf32>
    %6 = arith.addf %3, %5 : vector<16x160xf32>
    %cst_7 = arith.constant 5.000000e-01 : f32
    %7 = vector.broadcast %cst_7 : f32 to vector<16x160xf32>
    %8 = arith.mulf %7, %6 : vector<16x160xf32>
    %cst_8 = arith.constant 0.707106769 : f32
    %9 = vector.broadcast %cst_8 : f32 to vector<16x160xf32>
    %10 = arith.mulf %6, %9 : vector<16x160xf32>
    %11 = math.erf %10 : vector<16x160xf32>
    %cst_9 = arith.constant 1.000000e+00 : f32
    %12 = vector.broadcast %cst_9 : f32 to vector<16x160xf32>
    %13 = arith.addf %12, %11 : vector<16x160xf32>
    %14 = arith.mulf %8, %13 : vector<16x160xf32>
    %15 = tpu.iota {dimensions = array<i32: 1>} : vector<1x160xi32>
    %c128_i32 = arith.constant 128 : i32
    %16 = arith.muli %arg1, %c128_i32 : i32
    %17 = vector.broadcast %16 : i32 to vector<1x160xi32>
    %18 = arith.addi %15, %17 : vector<1x160xi32>
    %c16_i32 = arith.constant 16 : i32
    %19 = vector.broadcast %c16_i32 : i32 to vector<1x160xi32>
    %20 = arith.cmpi sge, %18, %19 : vector<1x160xi32>
    %c272_i32 = arith.constant 272 : i32
    %21 = vector.broadcast %c272_i32 : i32 to vector<1x160xi32>
    %22 = arith.cmpi slt, %18, %21 : vector<1x160xi32>
    %23 = arith.andi %20, %22 : vector<1x160xi1>
    %cst_10 = arith.constant 0.000000e+00 : f32
    %24 = vector.shape_cast %23 : vector<1x160xi1> to vector<1x160xi1>
    %25 = vector.broadcast %24 : vector<1x160xi1> to vector<16x160xi1>
    %26 = vector.broadcast %cst_10 : f32 to vector<16x160xf32>
    %27 = arith.select %25, %14, %26 : vector<16x160xi1>, vector<16x160xf32>
    %c16_i32_11 = arith.constant 16 : i32
    %c0_i32 = arith.constant 0 : i32
    %28 = arith.cmpi eq, %c16_i32_11, %c0_i32 : i32
    %c1_i32 = arith.constant 1 : i32
    %29 = arith.select %28, %c1_i32, %c16_i32_11 : i32
    %30 = vector.broadcast %29 : i32 to vector<1x160xi32>
    %31 = arith.remsi %15, %30 : vector<1x160xi32>
    %c0_i32_12 = arith.constant 0 : i32
    %32 = vector.broadcast %c0_i32_12 : i32 to vector<1x160xi32>
    %33 = arith.cmpi ne, %31, %32 : vector<1x160xi32>
    %c0_i32_13 = arith.constant 0 : i32
    %34 = vector.broadcast %c0_i32_13 : i32 to vector<1x160xi32>
    %35 = arith.cmpi slt, %31, %34 : vector<1x160xi32>
    %c0_i32_14 = arith.constant 0 : i32
    %36 = arith.cmpi slt, %29, %c0_i32_14 : i32
    %37 = vector.broadcast %36 : i1 to vector<1x160xi1>
    %38 = vector.broadcast %37 : vector<1x160xi1> to vector<1x160xi1>
    %39 = arith.xori %35, %38 : vector<1x160xi1>
    %40 = arith.andi %39, %33 : vector<1x160xi1>
    %41 = vector.broadcast %29 : i32 to vector<1x160xi32>
    %42 = arith.addi %31, %41 : vector<1x160xi32>
    %43 = arith.select %40, %42, %31 : vector<1x160xi1>, vector<1x160xi32>
    %c0_i32_15 = arith.constant 0 : i32
    %44 = vector.broadcast %c0_i32_15 : i32 to vector<1x160xi32>
    %45 = arith.cmpi ne, %43, %44 : vector<1x160xi32>
    %c15_i32 = arith.constant 15 : i32
    %46 = vector.broadcast %c15_i32 : i32 to vector<1x160xi32>
    %47 = arith.cmpi ne, %43, %46 : vector<1x160xi32>
    %c1_i32_16 = arith.constant 1 : i32
    %48 = tpu.dynamic_rotate %27 by %c1_i32_16 dim 1 : vector<16x160xf32>, i32 -> vector<16x160xf32>
    %cst_17 = arith.constant 0.000000e+00 : f32
    %49 = vector.shape_cast %45 : vector<1x160xi1> to vector<1x160xi1>
    %50 = vector.broadcast %49 : vector<1x160xi1> to vector<16x160xi1>
    %51 = vector.broadcast %cst_17 : f32 to vector<16x160xf32>
    %52 = arith.select %50, %48, %51 : vector<16x160xi1>, vector<16x160xf32>
    %c159_i32 = arith.constant 159 : i32
    %53 = tpu.dynamic_rotate %27 by %c159_i32 dim 1 : vector<16x160xf32>, i32 -> vector<16x160xf32>
    %cst_18 = arith.constant 0.000000e+00 : f32
    %54 = vector.shape_cast %47 : vector<1x160xi1> to vector<1x160xi1>
    %55 = vector.broadcast %54 : vector<1x160xi1> to vector<16x160xi1>
    %56 = vector.broadcast %cst_18 : f32 to vector<16x160xf32>
    %57 = arith.select %55, %53, %56 : vector<16x160xi1>, vector<16x160xf32>
    %c16_i32_19 = arith.constant 16 : i32
    %58 = tpu.dynamic_rotate %52 by %c16_i32_19 dim 1 : vector<16x160xf32>, i32 -> vector<16x160xf32>
    %c0_20 = arith.constant 0 : index
    %c0_21 = arith.constant 0 : index
    %c0_22 = arith.constant 0 : index
    %c0_23 = arith.constant 0 : index
    %59 = vector.load %arg5[%c0_20, %c0_21, %c0_22, %c0_23] : memref<3x3x16x1xf32, #tpu.memory_space<vmem>>, vector<1x1x16x1xf32>
    %60 = vector.shape_cast %59 : vector<1x1x16x1xf32> to vector<16x1xf32>
    %61 = vector.broadcast %60 : vector<16x1xf32> to vector<16x160xf32>
    %62 = arith.mulf %58, %61 : vector<16x160xf32>
    %c16_i32_24 = arith.constant 16 : i32
    %63 = tpu.dynamic_rotate %27 by %c16_i32_24 dim 1 : vector<16x160xf32>, i32 -> vector<16x160xf32>
    %c0_25 = arith.constant 0 : index
    %c1 = arith.constant 1 : index
    %c0_26 = arith.constant 0 : index
    %c0_27 = arith.constant 0 : index
    %64 = vector.load %arg5[%c0_25, %c1, %c0_26, %c0_27] : memref<3x3x16x1xf32, #tpu.memory_space<vmem>>, vector<1x1x16x1xf32>
    %65 = vector.shape_cast %64 : vector<1x1x16x1xf32> to vector<16x1xf32>
    %66 = vector.broadcast %65 : vector<16x1xf32> to vector<16x160xf32>
    %67 = arith.mulf %63, %66 : vector<16x160xf32>
    %68 = arith.addf %62, %67 : vector<16x160xf32>
    %c16_i32_28 = arith.constant 16 : i32
    %69 = tpu.dynamic_rotate %57 by %c16_i32_28 dim 1 : vector<16x160xf32>, i32 -> vector<16x160xf32>
    %c0_29 = arith.constant 0 : index
    %c2 = arith.constant 2 : index
    %c0_30 = arith.constant 0 : index
    %c0_31 = arith.constant 0 : index
    %70 = vector.load %arg5[%c0_29, %c2, %c0_30, %c0_31] : memref<3x3x16x1xf32, #tpu.memory_space<vmem>>, vector<1x1x16x1xf32>
    %71 = vector.shape_cast %70 : vector<1x1x16x1xf32> to vector<16x1xf32>
    %72 = vector.broadcast %71 : vector<16x1xf32> to vector<16x160xf32>
    %73 = arith.mulf %69, %72 : vector<16x160xf32>
    %74 = arith.addf %68, %73 : vector<16x160xf32>
    %c1_32 = arith.constant 1 : index
    %c0_33 = arith.constant 0 : index
    %c0_34 = arith.constant 0 : index
    %c0_35 = arith.constant 0 : index
    %75 = vector.load %arg5[%c1_32, %c0_33, %c0_34, %c0_35] : memref<3x3x16x1xf32, #tpu.memory_space<vmem>>, vector<1x1x16x1xf32>
    %76 = vector.shape_cast %75 : vector<1x1x16x1xf32> to vector<16x1xf32>
    %77 = vector.broadcast %76 : vector<16x1xf32> to vector<16x160xf32>
    %78 = arith.mulf %52, %77 : vector<16x160xf32>
    %79 = arith.addf %74, %78 : vector<16x160xf32>
    %c1_36 = arith.constant 1 : index
    %c1_37 = arith.constant 1 : index
    %c0_38 = arith.constant 0 : index
    %c0_39 = arith.constant 0 : index
    %80 = vector.load %arg5[%c1_36, %c1_37, %c0_38, %c0_39] : memref<3x3x16x1xf32, #tpu.memory_space<vmem>>, vector<1x1x16x1xf32>
    %81 = vector.shape_cast %80 : vector<1x1x16x1xf32> to vector<16x1xf32>
    %82 = vector.broadcast %81 : vector<16x1xf32> to vector<16x160xf32>
    %83 = arith.mulf %27, %82 : vector<16x160xf32>
    %84 = arith.addf %79, %83 : vector<16x160xf32>
    %c1_40 = arith.constant 1 : index
    %c2_41 = arith.constant 2 : index
    %c0_42 = arith.constant 0 : index
    %c0_43 = arith.constant 0 : index
    %85 = vector.load %arg5[%c1_40, %c2_41, %c0_42, %c0_43] : memref<3x3x16x1xf32, #tpu.memory_space<vmem>>, vector<1x1x16x1xf32>
    %86 = vector.shape_cast %85 : vector<1x1x16x1xf32> to vector<16x1xf32>
    %87 = vector.broadcast %86 : vector<16x1xf32> to vector<16x160xf32>
    %88 = arith.mulf %57, %87 : vector<16x160xf32>
    %89 = arith.addf %84, %88 : vector<16x160xf32>
    %c144_i32 = arith.constant 144 : i32
    %90 = tpu.dynamic_rotate %52 by %c144_i32 dim 1 : vector<16x160xf32>, i32 -> vector<16x160xf32>
    %c2_44 = arith.constant 2 : index
    %c0_45 = arith.constant 0 : index
    %c0_46 = arith.constant 0 : index
    %c0_47 = arith.constant 0 : index
    %91 = vector.load %arg5[%c2_44, %c0_45, %c0_46, %c0_47] : memref<3x3x16x1xf32, #tpu.memory_space<vmem>>, vector<1x1x16x1xf32>
    %92 = vector.shape_cast %91 : vector<1x1x16x1xf32> to vector<16x1xf32>
    %93 = vector.broadcast %92 : vector<16x1xf32> to vector<16x160xf32>
    %94 = arith.mulf %90, %93 : vector<16x160xf32>
    %95 = arith.addf %89, %94 : vector<16x160xf32>
    %c144_i32_48 = arith.constant 144 : i32
    %96 = tpu.dynamic_rotate %27 by %c144_i32_48 dim 1 : vector<16x160xf32>, i32 -> vector<16x160xf32>
    %c2_49 = arith.constant 2 : index
    %c1_50 = arith.constant 1 : index
    %c0_51 = arith.constant 0 : index
    %c0_52 = arith.constant 0 : index
    %97 = vector.load %arg5[%c2_49, %c1_50, %c0_51, %c0_52] : memref<3x3x16x1xf32, #tpu.memory_space<vmem>>, vector<1x1x16x1xf32>
    %98 = vector.shape_cast %97 : vector<1x1x16x1xf32> to vector<16x1xf32>
    %99 = vector.broadcast %98 : vector<16x1xf32> to vector<16x160xf32>
    %100 = arith.mulf %96, %99 : vector<16x160xf32>
    %101 = arith.addf %95, %100 : vector<16x160xf32>
    %c144_i32_53 = arith.constant 144 : i32
    %102 = tpu.dynamic_rotate %57 by %c144_i32_53 dim 1 : vector<16x160xf32>, i32 -> vector<16x160xf32>
    %c2_54 = arith.constant 2 : index
    %c2_55 = arith.constant 2 : index
    %c0_56 = arith.constant 0 : index
    %c0_57 = arith.constant 0 : index
    %103 = vector.load %arg5[%c2_54, %c2_55, %c0_56, %c0_57] : memref<3x3x16x1xf32, #tpu.memory_space<vmem>>, vector<1x1x16x1xf32>
    %104 = vector.shape_cast %103 : vector<1x1x16x1xf32> to vector<16x1xf32>
    %105 = vector.broadcast %104 : vector<16x1xf32> to vector<16x160xf32>
    %106 = arith.mulf %102, %105 : vector<16x160xf32>
    %107 = arith.addf %101, %106 : vector<16x160xf32>
    %108 = vector.extract_strided_slice %107 {offsets = [0, 16], sizes = [16, 128], strides = [1, 1]} : vector<16x160xf32> to vector<16x128xf32>
    %c0_58 = arith.constant 0 : index
    %c0_59 = arith.constant 0 : index
    %109 = vector.load %arg6[%c0_58, %c0_59] : memref<16x1xf32, #tpu.memory_space<vmem>>, vector<16x1xf32>
    %110 = vector.broadcast %109 : vector<16x1xf32> to vector<16x128xf32>
    %111 = arith.addf %108, %110 : vector<16x128xf32>
    %cst_60 = arith.constant 5.000000e-01 : f32
    %112 = vector.broadcast %cst_60 : f32 to vector<16x128xf32>
    %113 = arith.mulf %112, %111 : vector<16x128xf32>
    %cst_61 = arith.constant 0.707106769 : f32
    %114 = vector.broadcast %cst_61 : f32 to vector<16x128xf32>
    %115 = arith.mulf %111, %114 : vector<16x128xf32>
    %116 = math.erf %115 : vector<16x128xf32>
    %cst_62 = arith.constant 1.000000e+00 : f32
    %117 = vector.broadcast %cst_62 : f32 to vector<16x128xf32>
    %118 = arith.addf %117, %116 : vector<16x128xf32>
    %119 = arith.mulf %113, %118 : vector<16x128xf32>
    %c0_63 = arith.constant 0 : index
    %c0_64 = arith.constant 0 : index
    %120 = vector.load %arg7[%c0_63, %c0_64] : memref<4x16xf32, #tpu.memory_space<vmem>>, vector<4x16xf32>
    %cst_65 = arith.constant dense<0.000000e+00> : vector<4x128xf32>
    %121 = tpu.matmul %120, %119, %cst_65 {dimension_numbers = #tpu.dot_dimension_numbers<[1], [0], [0], [1], [0, 0, 1, 1], [], []>} : vector<4x16xf32>, vector<16x128xf32>, vector<4x128xf32> -> vector<4x128xf32>
    %c0_66 = arith.constant 0 : index
    %c0_67 = arith.constant 0 : index
    %122 = vector.load %arg8[%c0_66, %c0_67] : memref<4x1xf32, #tpu.memory_space<vmem>>, vector<4x1xf32>
    %123 = vector.broadcast %122 : vector<4x1xf32> to vector<4x128xf32>
    %124 = arith.addf %121, %123 : vector<4x128xf32>
    %125 = vector.extract_strided_slice %1 {offsets = [0, 16], sizes = [4, 128], strides = [1, 1]} : vector<4x160xf32> to vector<4x128xf32>
    %126 = arith.addf %125, %124 : vector<4x128xf32>
    %c0_68 = arith.constant 0 : index
    %c0_69 = arith.constant 0 : index
    %c0_70 = arith.constant 0 : index
    %127 = vector.load %arg9[%c0_68, %c0_69, %c0_70] : memref<1x4x128xf32, #tpu.memory_space<vmem>>, vector<1x4x128xf32>
    %128 = vector.shape_cast %127 : vector<1x4x128xf32> to vector<4x128xf32>
    %129 = vector.shape_cast %126 : vector<4x128xf32> to vector<1x4x128xf32>
    tpu.vector_store %arg9[%c0_68, %c0_69, %c0_70], %129 {strides = array<i32>} : memref<1x4x128xf32, #tpu.memory_space<vmem>>, vector<1x4x128xf32>,
    return
  }
  func.func @transform_0(%arg0: i32, %arg1: i32) -> (i32, i32, i32, i32) {
    %c0_i32 = arith.constant 0 : i32
    %c0_i32_0 = arith.constant 0 : i32
    %c0_i32_1 = arith.constant 0 : i32
    return %arg0, %arg1, %c0_i32, %c0_i32_0 : i32, i32, i32, i32
  }
  func.func @transform_1(%arg0: i32, %arg1: i32) -> (i32, i32) {
    %c0_i32 = arith.constant 0 : i32
    %c0_i32_0 = arith.constant 0 : i32
    %c0_i32_1 = arith.constant 0 : i32
    return %c0_i32, %c0_i32_0 : i32, i32
  }
  func.func @transform_2(%arg0: i32, %arg1: i32) -> (i32, i32) {
    %c0_i32 = arith.constant 0 : i32
    %c0_i32_0 = arith.constant 0 : i32
    %c0_i32_1 = arith.constant 0 : i32
    return %c0_i32, %c0_i32_0 : i32, i32
  }
  func.func @transform_3(%arg0: i32, %arg1: i32) -> (i32, i32, i32, i32) {
    %c0_i32 = arith.constant 0 : i32
    %c0_i32_0 = arith.constant 0 : i32
    %c0_i32_1 = arith.constant 0 : i32
    %c0_i32_2 = arith.constant 0 : i32
    %c0_i32_3 = arith.constant 0 : i32
    return %c0_i32, %c0_i32_0, %c0_i32_1, %c0_i32_2 : i32, i32, i32, i32
  }
  func.func @transform_4(%arg0: i32, %arg1: i32) -> (i32, i32) {
    %c0_i32 = arith.constant 0 : i32
    %c0_i32_0 = arith.constant 0 : i32
    %c0_i32_1 = arith.constant 0 : i32
    return %c0_i32, %c0_i32_0 : i32, i32
  }
  func.func @transform_5(%arg0: i32, %arg1: i32) -> (i32, i32) {
    %c0_i32 = arith.constant 0 : i32
    %c0_i32_0 = arith.constant 0 : i32
    %c0_i32_1 = arith.constant 0 : i32
    return %c0_i32, %c0_i32_0 : i32, i32
  }
  func.func @transform_6(%arg0: i32, %arg1: i32) -> (i32, i32) {
    %c0_i32 = arith.constant 0 : i32
    %c0_i32_0 = arith.constant 0 : i32
    %c0_i32_1 = arith.constant 0 : i32
    return %c0_i32, %c0_i32_0 : i32, i32
  }
  func.func @transform_7(%arg0: i32, %arg1: i32) -> (i32, i32, i32) {
    %c0_i32 = arith.constant 0 : i32
    %c0_i32_0 = arith.constant 0 : i32
    return %arg0, %c0_i32, %arg1 : i32, i32, i32
  }
}

</mosaic_0001>

<bundles_post_ra>
// kernel: tpu_custom_call.1
= control target key start
LH: loop header
LB: loop body
LE: loop exit
PB: predicated region body
PF: predicated region fallthrough
CT: control target
= control target key end

     0   :  { %12 = vsyncpa [#allocation3], 0  ;;  %s2147_s0 = inlined_call_operand.vmem [shape: f32[2,2,4,160], index: 0, kind: input, shape index: {}]   ;;  %s2148_s1 = inlined_call_operand.vmem [shape: f32[16,4], index: 1, kind: input, shape index: {}]   ;;  %s2149_s2 = inlined_call_operand.vmem [shape: f32[16,1], index: 2, kind: input, shape index: {}]   ;;  %s2150_s3 = inlined_call_operand.vmem [shape: f32[3,3,16,1], index: 3, kind: input, shape index: {}]   ;;  %s2151_s4 = inlined_call_operand.vmem [shape: f32[16,1], index: 4, kind: input, shape index: {}]   ;;  %s2152_s5 = inlined_call_operand.vmem [shape: f32[4,16], index: 5, kind: input, shape index: {}]   ;;  %s2153_s6 = inlined_call_operand.vmem [shape: f32[4,1], index: 6, kind: input, shape index: {}]   ;;  %s2154_s7 = inlined_call_operand.hbm [shape: f32[2,4,256], index: 7, kind: output, shape index: {}]  }
   0x1   :  { %14 = vsyncpa [#allocation3 + $0x1], 0  ;;  %s1589_s24 = smov 0   ;;  %s1591_s25 = smov 0  }
   0x2   :  { %s1593_s26 = smov 0   ;;  %s1595_s27 = smov 0  }
   0x3   :  { %s1597_s28 = smov 0   ;;  %s1599_s29 = smov 0  }
   0x4   :  { %s1601_s30 = smov 0   ;;  %s1603_s8 = smov 0  }
   0x5 LB: > { %2158 = sst [smem:[#allocation5_spill]] %s1536_s30  ;;  %s1292_s9 = sadd.s32 4294967295, %s1540_s8   ;;  %s1540_s8 = sphi %s1603_s8, %s20_s8   ;;  %s1536_s30 = sphi %s1601_s30, %s2173_s30   ;;  %s1532_s29 = sphi %s1599_s29, %s2178_s29   ;;  %s1528_s28 = sphi %s1597_s28, %s2171_s28   ;;  %s1524_s27 = sphi %s1595_s27, %s2177_s27   ;;  %s1520_s26 = sphi %s1593_s26, %s2176_s26   ;;  %s1516_s25 = sphi %s1591_s25, %s2175_s25   ;;  %s1512_s24 = sphi %s1589_s24, %s2174_s24  }
   0x6   : > { %s1293_s10 = sadd.s32 4294967294, %s1540_s8   ;;  %s29_s11 = sadd.s32 1, %s1532_s29 }
   0x7   : > { %p30_p0 = scmp.ge.s32.totalorder %s29_s11, 2  ;;  %s32_s12 = sadd.s32 1, %s1536_s30 }
   0x8   : > { %p205_p1 = scmp.ne.s32.totalorder %s1520_s26, %s1516_s25  ;;  %p206_p2 = scmp.eq.s32.totalorder %s1292_s9, 3 }
   0x9   : > { %s2180_s11 = smov (%p30_p0, %s29_s11), 0  ;;  %s2182_s12 = smov (!%p30_p0, %s32_s12), %s1536_s30 }
   0xa   : > { %2159 = sst [smem:[#allocation6_spill]] %s2180_s11  ;;  %s191_s13 = ssub.s32 %s1532_s29, %s2180_s11 }
   0xb   : > { %p1640_p3 = por %p206_p2, %p205_p1  ;;  %p34_p4 = scmp.ge.s32.totalorder %s2182_s12, 2 }
   0xc   : > { %p211_p5 = scmp.ne.s32.totalorder %s1516_s25, %s1512_s24  ;;  %p212_p6 = scmp.eq.s32.totalorder %s1293_s10, 3 }
   0xd   : > { %p1296_p7 = scmp.ge.s32.totalorder %s1540_s8, 1  ;;  %s2184_s12 = smov (%p34_p4, %s2182_s12), 0 }
   0xe   : > { %2161 = sst [smem:[#allocation7_spill]] %s2184_s12  ;;  %p1649_p8 = por %p212_p6, %p211_p5 }
   0xf   : > { %p260_p9 = scmp.lt.s32.totalorder %s1540_s8, 5  ;;  %s190_s16 = ssub.s32 %s1536_s30, %s2184_s12 }
  0x10   : > { %s195_s17 = sadd.s32 1, %s1520_s26  ;;  %s192_s18 = sor.u32 %s191_s13, %s190_s16 }
  0x11   : > { %p261_p10 = pnand %p1296_p7, %p260_p9  ;;  %p193_p11 = scmp.eq.s32.totalorder %s192_s18, 0 }
  0x12   : > { %p296_p12 = scmp.lt.s32.totalorder (!%p261_p10), %s1528_s28, 1  ;;  %p298_p13 = scmp.lt.s32.totalorder (!%p261_p10), %s1524_s27, 1 }
  0x13   : > { %s1658_s19 = scalar_select %p193_p11, %s1520_s26, %s195_s17  }
  0x14   : > { %264 = sbr.rel (%p261_p10) target bundleno = 1387 (0x56b), region = 48  ;;  %s1311_s30 = sshll.u32 (!%p261_p10), %s1524_s27, 7 }
  0x15   : > { %s1543_s11 = smov (!%p261_p10), 127  }
  0x19   : > { %v309_v0 = vld [vmem:[%s2149_s2 + $0x8] sm:$0xff]  ;;  %s297_s22 = scalar_select %p296_p12, %s1528_s28, 1  ;;  %v1542_v1 = vmov 0   ;;  %v308_v2 = vld [vmem:[%s2149_s2] sm:$0xff]  ;;  %vm331_vm0 = vcmask 1043456   ;;  %vm324_vm1 = vcmask 31744  }
  0x1a   : > { %1417 = vset.pattern.permute.xlu0 %v1542_v1  ;;  %1418 = vset.pattern.permute.xlu1 %v1542_v1  ;;  %s299_s23 = scalar_select %p298_p13, %s1524_s27, 1  ;;  %v306_v4 = vld [vmem:[%s2148_s1] sm:$0xff]  ;;  %v307_v5 = vld [vmem:[%s2148_s1 + $0x8] sm:$0xff] }
  0x1b   : > { %317 = vperm.xlu0 %1417, %v309_v0   ;;  %1419 = vset.pattern.permute.xlu2 %v1542_v1  ;;  %s1299_s9 = sshll.u32 %s297_s22, 2 }
  0x1c   : > { %s1298_s10 = sshll.u32 %s299_s23, 1 }
  0x1d   : > { %s302_s13 = sadd.s32 %s1299_s9, %s1298_s10  ;;  %s1544_s10 = smov 32  }
  0x1e   : > { %s1300_s16 = sshll.u32 %s302_s13, 2  ;;  %s1545_s13 = smov 97  }
  0x1f   : > { %s304_s12 = scalar_lea.vmem %s2147_s0, %s1300_s16  ;;  %s1334_s9 = sshll.u32 %s1528_s28, 1 }
  0x20   : > { %v1673_v3 = vld [vmem:[%s304_s12] sm:$0xff]  ;;  %s1548_s12 = smov 112   ;;  %s1204_s16 = sadd.s32 %s1524_s27, %s1334_s9 }
  0x21   : > { %321 = vst [vmem:[#allocation1] ss:$2 sm:$0xff] %v1673_v3  ;;  %s1335_s18 = sshll.u32 %s1204_s16, 2  ;;  %s1466_s16 = scalar_lea.hbm %s2154_s7, 16 }
  0x23   : > { %312 = vperm.xlu0 %1417, %v308_v2  }
  0x28   : > { %v322_v6 = vld.sshfl [vmem:[#allocation1] sm:$0xff pattern:$0x75316420]  ;;  %v323_v7 = vld.sshfl [vmem:[#allocation1 + $0x8] sm:$0xff pattern:$0x75316420] }
  0x29   : > { %1301 = vmatpush.msk.msra.mxu0 %vm331_vm0, %v322_v6  ;;  %1338 = vmatpush.msk.msra.mxu3 %vm331_vm0, %v322_v6 }
  0x2a   : > { %1304 = vmatpush.msk.msra.mxu1 %vm331_vm0, %v323_v7  ;;  %1302 = vmatmul.msk.f32.vlgmr.msra.gmra.mxu0 %vm324_vm1, %v306_v4 }
  0x2b   : > { %1303 = vmatmul.msk.f32.vlgmr.msra.gmra.mxu3 %vm324_vm1, %v307_v5  ;;  %1305 = vmatmul.msk.f32.vlgmr.msra.gmra.mxu1 %vm324_vm1, %v306_v4 }
  0x33   : > { %1306 = vmatmul.msk.f32.gmra.mxu1 %vm324_vm1, %v307_v5 }
  0x8d   : > { %v318_v8 = vpop.permute.xlu0 %317 }
  0x95   : > { %v1682_v9 = vpop.permute.xlu0 %312 }
  0xa7   : > { %v353_v10 = vpop.f32.mrf.mxu0 }
  0xa8   : > { %v1685_v11 = vadd.f32 %v353_v10, %v1682_v9  ;;  %v1687_v12 = vpop.f32.mrf.mxu1 }
  0xaa   : > { %v1690_v13 = vmul.f32 0.70710677, %v1685_v11 }
  0xac   : > { %v390_v14 = vmul.f32 %v1690_v13, %v1690_v13 }
  0xae   : > { %v391_v15 = vmin.f32 %v390_v14, 16.0  ;;  %v356_v16 = vpop.f32.mrf.mxu3 }
  0xaf   : > { %v1694_v17 = vadd.f32 %v356_v16, %v318_v8 }
  0xb0   : > { %v392_v18 = vmul.f32 2.1237322e-06, %v391_v15  ;;  %v403_v19 = vmul.f32 3.8918573e-05, %v391_v15  ;;  %v379_v20 = vpop.f32.mrf.mxu1 }
  0xb1   : > { %v1696_v21 = vadd.f32 %v379_v20, %v318_v8  ;;  %v1699_v24 = vmul.f32 0.70710677, %v1694_v17 }
  0xb2   : > { %v393_v22 = vadd.f32 0.00028619796, %v392_v18  ;;  %v404_v23 = vadd.f32 0.001143296, %v403_v19  ;;  %v558_v18 = vlaneseq }
  0xb3   : > { %v470_v27 = vmul.f32 %v1699_v24, %v1699_v24  ;;  %v1704_v28 = vmul.f32 0.70710677, %v1696_v21 }
  0xb4   : > { %v394_v25 = vmul.f32 %v393_v22, %v391_v15  ;;  %v405_v26 = vmul.f32 %v404_v23, %v391_v15 }
  0xb5   : > { %v1706_v31 = vmin.f32 %v470_v27, 16.0  ;;  %v510_v32 = vmul.f32 %v1704_v28, %v1704_v28  ;;  %v1729_v27 = vstv %s1311_s30 }
  0xb6   : > { %v395_v29 = vadd.f32 0.0036580483, %v394_v25  ;;  %v406_v30 = vadd.f32 0.014752088, %v405_v26 }
  0xb7   : > { %v472_v34 = vmul.f32 2.1237322e-06, %v1706_v31  ;;  %v483_v35 = vmul.f32 3.8918573e-05, %v1706_v31  ;;  %v1712_v36 = vmin.f32 %v510_v32, 16.0  ;;  %v1731_v32 = vand.u32 127, %v558_v18 }
  0xb8   : > { %v407_v33 = vmul.f32 %v406_v30, %v391_v15  ;;  %v396_v37 = vmul.f32 %v395_v29, %v391_v15 }
  0xb9   : > { %v473_v39 = vadd.f32 0.00028619796, %v472_v34  ;;  %v484_v40 = vadd.f32 0.001143296, %v483_v35  ;;  %v512_v43 = vmul.f32 2.1237322e-06, %v1712_v36 }
  0xba   : > { %v408_v38 = vadd.f32 0.112945676, %v407_v33  ;;  %v523_v44 = vmul.f32 3.8918573e-05, %v1712_v36  ;;  %v397_v45 = vadd.f32 0.05243302, %v396_v37 }
  0xbb   : > { %v485_v42 = vmul.f32 %v484_v40, %v1706_v31  ;;  %v474_v47 = vmul.f32 %v473_v39, %v1706_v31  ;;  %v513_v51 = vadd.f32 0.00028619796, %v512_v43  ;;  %v563_v39 = vadd.s32 %v1729_v27, %v1731_v32 }
  0xbc   : > { %v409_v41 = vmul.f32 %v408_v38, %v391_v15  ;;  %v524_v52 = vadd.f32 0.001143296, %v523_v44  ;;  %v398_v53 = vmul.f32 %v397_v45, %v391_v15 }
  0xbd   : > { %v486_v48 = vadd.f32 0.014752088, %v485_v42  ;;  %v475_v55 = vadd.f32 0.0036580483, %v474_v47  ;;  %v514_v58 = vmul.f32 %v513_v51, %v1712_v36  ;;  %vm565_vm6 = vcmp.ge.s32.totalorder %v563_v39, 16 }
  0xbe   : > { %v410_v46 = vadd.f32 0.4994258, %v409_v41  ;;  %v525_v57 = vmul.f32 %v524_v52, %v1712_v36  ;;  %v399_v59 = vadd.f32 0.18741608, %v398_v53  ;;  %vm567_vm7 = vcmp.lt.s32.totalorder %v563_v39, 272 }
  0xbf   : > { %v487_v50 = vmul.f32 %v486_v48, %v1706_v31  ;;  %v476_v60 = vmul.f32 %v475_v55, %v1706_v31  ;;  %v515_v0 = vadd.f32 0.0036580483, %v514_v58  ;;  %vm1740_vm9 = vmand %vm565_vm6, %vm567_vm7 }
  0xc0   : > { %v411_v49 = vmul.f32 %v410_v46, %v391_v15  ;;  %v526_v62 = vadd.f32 0.014752088, %v525_v57  ;;  %v400_v4 = vmul.f32 %v399_v59, %v391_v15 }
  0xc1   : > { %v488_v56 = vadd.f32 0.112945676, %v487_v50  ;;  %v477_v5 = vadd.f32 0.05243302, %v476_v60  ;;  %v516_v16 = vmul.f32 %v515_v0, %v1712_v36 }
  0xc2   : > { %v412_v54 = vadd.f32 1.0, %v411_v49  ;;  %v527_v1 = vmul.f32 %v526_v62, %v1712_v36  ;;  %v401_v19 = vadd.f32 1.1283791, %v400_v4 }
  0xc3   : > { %v489_v61 = vmul.f32 %v488_v56, %v1706_v31  ;;  %v478_v22 = vmul.f32 %v477_v5, %v1706_v31  ;;  %v517_v30 = vadd.f32 0.05243302, %v516_v16 }
  0xc4   : > { %1430 = vrcp.f32 %v412_v54  ;;  %v528_v8 = vadd.f32 0.112945676, %v527_v1  ;;  %v424_v20 = vand.u32 2147483648, %v412_v54  ;;  %v422_v15 = vand.u32 2147483647, %v412_v54 }
  0xc5   : > { %v490_v63 = vadd.f32 0.4994258, %v489_v61  ;;  %vm418_vm3 = vweird.f32 %v412_v54  ;;  %v479_v34 = vadd.f32 0.18741608, %v478_v22  ;;  %v402_v37 = vmul.f32 %v401_v19, %v1690_v13 }
  0xc6   : > { %v529_v23 = vmul.f32 %v528_v8, %v1712_v36  ;;  %v425_v33 = vor.u32 1.1754944e-38, %v424_v20  ;;  %vm423_vm5 = vcmp.eq.f32.partialorder %v422_v15, 8.507059e+37  ;;  %v518_v44 = vmul.f32 %v517_v30, %v1712_v36  ;;  %v1315_v30 = vld [vmem:[%s2150_s3 + $0x28] sm:$0xff] }
  0xc7   : > { %v491_v7 = vmul.f32 %v490_v63, %v1706_v31  ;;  %v480_v45 = vmul.f32 %v479_v34, %v1706_v31  ;;  %v382_v13 = vmul.f32 0.5, %v1685_v11 }
  0xc8   : > { %v530_v26 = vadd.f32 0.4994258, %v529_v23  ;;  %v519_v51 = vadd.f32 0.18741608, %v518_v44 }
  0xc9   : > { %v492_v14 = vadd.f32 1.0, %v491_v7  ;;  %v481_v52 = vadd.f32 1.1283791, %v480_v45  ;;  %v384_v7 = vmul.f32 0.5, %v1694_v17 }
  0xca   : > { %v1431_v2 = vpop.eup %1430  ;;  %v531_v35 = vmul.f32 %v530_v26, %v1712_v36  ;;  %v520_v59 = vmul.f32 %v519_v51, %v1712_v36  ;;  %v385_v26 = vmul.f32 0.5, %v1696_v21  ;;  %v377_v21 = vadd.f32 %v1687_v12, %v1682_v9 }
  0xcb   : > { %v414_v6 = vmul.f32 %v1431_v2, %v412_v54  ;;  %vm419_vm2 = vweird.f32 %v1431_v2  ;;  %1432 = vrcp.f32 %v492_v14  ;;  %v504_v50 = vand.u32 2147483648, %v492_v14 }
  0xcc   : > { %vm420_vm4 = vmor %vm418_vm3, %vm419_vm2  ;;  %v532_v41 = vadd.f32 1.0, %v531_v35  ;;  %v502_v54 = vand.u32 2147483647, %v492_v14  ;;  %vm498_vm10 = vweird.f32 %v492_v14  ;;  %v482_v60 = vmul.f32 %v481_v52, %v1699_v24  ;;  %v1317_v24 = vld [vmem:[%s2150_s3 + $0x38] sm:$0xff] }
  0xcd   : > { %v415_v10 = vsub.f32 1.0, %v414_v6  ;;  %v505_v58 = vor.u32 1.1754944e-38, %v504_v50 }
  0xce   : > { %1434 = vrcp.f32 %v532_v41  ;;  %vm503_vm12 = vcmp.eq.f32.partialorder %v502_v54, 8.507059e+37  ;;  %v544_v4 = vand.u32 2147483648, %v532_v41  ;;  %v542_v6 = vand.u32 2147483647, %v532_v41 }
  0xcf   : > { %v416_v25 = vmul.f32 %v1431_v2, %v415_v10  ;;  %vm538_vm14 = vweird.f32 %v532_v41 }
  0xd0   : > { %v545_v16 = vor.u32 1.1754944e-38, %v544_v4  ;;  %vm543_vm0 = vcmp.eq.f32.partialorder %v542_v6, 8.507059e+37 }
  0xd1   : > { %v417_v29 = vadd.f32 %v1431_v2, %v416_v25  ;;  %v1433_v42 = vpop.eup %1432 }
  0xd2   : > { %v494_v46 = vmul.f32 %v1433_v42, %v492_v14  ;;  %vm499_vm8 = vweird.f32 %v1433_v42  ;;  %v1757_v14 = vadd.s32 128, %v1731_v32 }
  0xd3   : > { %v421_v38 = vsel %vm420_vm4, %v1431_v2, %v417_v29  ;;  %vm500_vm11 = vmor %vm498_vm10, %vm499_vm8  ;;  %v521_v2 = vadd.f32 1.1283791, %v520_v59  ;;  %vm607_vm8 = vcmask 1047808  }
  0xd4   : > { %v426_v40 = vsel %vm423_vm5, %v425_v33, %v421_v38  ;;  %v495_v48 = vsub.f32 1.0, %v494_v46  ;;  %v1435_v57 = vpop.eup %1434  ;;  %v564_v25 = vadd.s32 %v1729_v27, %v1757_v14  ;;  %v387_v27 = vmul.f32 0.70710677, %v377_v21 }
  0xd5   : > { %v427_v43 = vmul.f32 %v426_v40, %v402_v37  ;;  %v534_v62 = vmul.f32 %v1435_v57, %v532_v41  ;;  %vm539_vm13 = vweird.f32 %v1435_v57  ;;  %v522_v19 = vmul.f32 %v521_v2, %v1704_v28 }
  0xd6   : > { %v496_v53 = vmul.f32 %v1433_v42, %v495_v48  ;;  %vm540_vm15 = vmor %vm538_vm14, %vm539_vm13  ;;  %vm566_vm1 = vcmp.ge.s32.totalorder %v564_v25, 16  ;;  %vm568_vm2 = vcmp.lt.s32.totalorder %v564_v25, 272  ;;  %v430_v34 = vmul.f32 %v387_v27, %v387_v27  ;;  %v685_v25 = vld [vmem:[%s2150_s3 + $0x8] sm:$0xff] }
  0xd7   : > { %v1307_v47 = vclamps-f32 %v427_v43, 1.0  ;;  %v535_v1 = vsub.f32 1.0, %v534_v62  ;;  %vm1769_vm3 = vmand %vm566_vm1, %vm568_vm2 }
  0xd8   : > { %v497_v56 = vadd.f32 %v1433_v42, %v496_v53  ;;  %v431_v35 = vmin.f32 %v430_v34, 16.0 }
  0xd9   : > { %v550_v49 = vadd.f32 1.0, %v1307_v47  ;;  %v536_v36 = vmul.f32 %v1435_v57, %v535_v1 }
  0xda   : > { %v501_v61 = vsel %vm500_vm11, %v1433_v42, %v497_v56  ;;  %v443_v37 = vmul.f32 3.8918573e-05, %v431_v35  ;;  %v432_v45 = vmul.f32 2.1237322e-06, %v431_v35  ;;  %vm636_vm11 = vcmask 793600  }
  0xdb   : > { %v554_v31 = vmul.f32 %v550_v49, %v382_v13  ;;  %v506_v63 = vsel %vm503_vm12, %v505_v58, %v501_v61  ;;  %v537_v10 = vadd.f32 %v1435_v57, %v536_v36  ;;  %v383_v36 = vmul.f32 0.5, %v377_v21 }
  0xdc   : > { %v507_v0 = vmul.f32 %v506_v63, %v482_v60  ;;  %v444_v38 = vadd.f32 0.001143296, %v443_v37  ;;  %v433_v47 = vadd.f32 0.00028619796, %v432_v45 }
  0xdd   : > { %v1747_v11 = vsel %vm1740_vm9, %v554_v31, 0.0  ;;  %v541_v20 = vsel %vm540_vm15, %v1435_v57, %v537_v10  ;;  %vm783_vm15 = vcmask 130048  }
  0xde   : > { %653 = vrot.lane.b32.xlu0 %v1747_v11, %s1543_s11  ;;  %v1309_v5 = vclamps-f32 %v507_v0, 1.0  ;;  %v546_v22 = vsel %vm543_vm0, %v545_v16, %v541_v20  ;;  %v445_v39 = vmul.f32 %v444_v38, %v431_v35  ;;  %v434_v13 = vmul.f32 %v433_v47, %v431_v35 }
  0xdf   : > { %v547_v17 = vmul.f32 %v546_v22, %v522_v19  ;;  %v1321_v22 = vld [vmem:[%s2150_s3 + $0x58] sm:$0xff] }
  0xe0   : > { %v552_v8 = vadd.f32 1.0, %v1309_v5  ;;  %v446_v40 = vadd.f32 0.014752088, %v445_v39  ;;  %v435_v49 = vadd.f32 0.0036580483, %v434_v13 }
  0xe1   : > { %v1310_v15 = vclamps-f32 %v547_v17, 1.0  ;;  %v1318_v17 = vld [vmem:[%s2150_s3 + $0x40] sm:$0xff] }
  0xe2   : > { %v556_v18 = vmul.f32 %v552_v8, %v384_v7  ;;  %v447_v41 = vmul.f32 %v446_v40, %v431_v35  ;;  %v436_v50 = vmul.f32 %v435_v49, %v431_v35  ;;  %v1320_v40 = vld [vmem:[%s2150_s3 + $0x50] sm:$0xff] }
  0xe3   : > { %v553_v28 = vadd.f32 1.0, %v1310_v15  ;;  %v1312_v15 = vld [vmem:[%s2150_s3 + $0x10] sm:$0xff] }
  0xe4   : > { %v1762_v23 = vsel %vm1740_vm9, %v556_v18, 0.0  ;;  %v448_v42 = vadd.f32 0.112945676, %v447_v41  ;;  %v437_v12 = vadd.f32 0.05243302, %v436_v50  ;;  %v1316_v18 = vld [vmem:[%s2150_s3 + $0x30] sm:$0xff] }
  0xe5   : > { %611 = vrot.lane.b32.xlu1 %v1762_v23, %s1544_s10  ;;  %v557_v29 = vmul.f32 %v553_v28, %v385_v26  ;;  %vm661_vm9 = vcmask 1039360   ;;  %v1313_v41 = vld [vmem:[%s2150_s3 + $0x18] sm:$0xff] }
  0xe6   : > { %764 = vperm.xlu0 %1417, %v1317_v24   ;;  %v449_v43 = vmul.f32 %v448_v42, %v431_v35  ;;  %v438_v52 = vmul.f32 %v437_v12, %v431_v35  ;;  %v684_v42 = vld [vmem:[%s2150_s3] sm:$0xff] }
  0xe7   : > { %v1775_v33 = vsel %vm1769_vm3, %v557_v29, 0.0  ;;  %v583_v29 = vand.u32 15, %v1731_v32  ;;  %v1319_v32 = vld [vmem:[%s2150_s3 + $0x48] sm:$0xff] }
  0xe8   : > { %v450_v44 = vadd.f32 0.4994258, %v449_v43  ;;  %v439_v54 = vadd.f32 0.18741608, %v438_v52 }
  0xe9   : > { %vm605_vm10 = vcmp.ne.s32.totalorder %v583_v29, 15  ;;  %vm603_vm12 = vcmp.ne.s32.totalorder %v583_v29, 0  ;;  %v1128_v29 = vld [vmem:[%s2153_s6] sm:$0xf] }
  0xea   : > { %v451_v46 = vmul.f32 %v450_v44, %v431_v35  ;;  %v440_v31 = vmul.f32 %v439_v54, %v431_v35 }
  0xec   : > { %v452_v48 = vadd.f32 1.0, %v451_v46  ;;  %v441_v59 = vadd.f32 1.1283791, %v440_v31 }
  0xed   : > { %608 = vrot.lane.b32.xlu1 %v1747_v11, %s1544_s10 }
  0xee   : > { %1436 = vrcp.f32 %v452_v48  ;;  %v464_v57 = vand.u32 2147483648, %v452_v48  ;;  %vm458_vm5 = vweird.f32 %v452_v48  ;;  %v462_v58 = vand.u32 2147483647, %v452_v48 }
  0xef   : > { %v442_v63 = vmul.f32 %v441_v59, %v387_v27 }
  0xf0   : > { %v465_v61 = vor.u32 1.1754944e-38, %v464_v57  ;;  %vm463_vm7 = vcmp.eq.f32.partialorder %v462_v58, 8.507059e+37  ;;  %v1314_v57 = vld [vmem:[%s2150_s3 + $0x20] sm:$0xff] }
  0xf4   : > { %v1437_v9 = vpop.eup %1436 }
  0xf5   : > { %657 = vrot.lane.b32.xlu1 %v1762_v23, %s1543_s11  ;;  %v454_v51 = vmul.f32 %v1437_v9, %v452_v48  ;;  %vm459_vm4 = vweird.f32 %v1437_v9  ;;  %v590_v48 = vand.u32 15, %v1757_v14 }
  0xf6   : > { %vm460_vm6 = vmor %vm458_vm5, %vm459_vm4 }
  0xf7   : > { %v455_v53 = vsub.f32 1.0, %v454_v51  ;;  %vm1857_vm13 = vcmp.ne.s32.totalorder %v590_v48, 15  ;;  %vm1861_vm14 = vcmp.ne.s32.totalorder %v590_v48, 0 }
  0xf9   : > { %v456_v55 = vmul.f32 %v1437_v9, %v455_v53 }
  0xfb   : > { %v457_v56 = vadd.f32 %v1437_v9, %v456_v55 }
  0xfd   : > { %v461_v60 = vsel %vm460_vm6, %v1437_v9, %v457_v56 }
  0xfe   : > { %v466_v62 = vsel %vm463_vm7, %v465_v61, %v461_v60 }
  0xff   : > { %v467_v0 = vmul.f32 %v466_v62, %v442_v63 }
 0x101   : > { %v1308_v1 = vclamps-f32 %v467_v0, 1.0 }
 0x103   : > { %v551_v2 = vadd.f32 1.0, %v1308_v1 }
 0x105   : > { %v555_v6 = vmul.f32 %v551_v2, %v383_v36  ;;  %v1323_v36 = vld [vmem:[%s2150_s3 + $0x68] sm:$0xff] }
 0x107   : > { %v1792_v7 = vsel %vm1769_vm3, %v555_v6, 0.0 }
 0x150   : > { %v654_v21 = vpop.permute.xlu0 %653 }
 0x157   : > { %v612_v4 = vpop.permute.xlu1 %611 }
 0x158   : > { %v1785_v5 = vsel %vm607_vm8, %v612_v4, %v1775_v33  ;;  %v765_v43 = vpop.permute.xlu0 %764 }
 0x159   : > { %616 = vrot.lane.b32.xlu2 %v1785_v5, %s1544_s10  ;;  %632 = vrot.lane.b32.xlu0 %v1785_v5, %s1545_s13 }
 0x15f   : > { %v609_v24 = vpop.permute.xlu1 %608 }
 0x160   : > { %v1796_v8 = vsel %vm607_vm8, %v609_v24, %v1792_v7 }
 0x161   : > { %655 = vrot.lane.b32.xlu1 %v1796_v8, %s1543_s11  ;;  %614 = vrot.lane.b32.xlu2 %v1796_v8, %s1544_s10 }
 0x167   : > { %v658_v26 = vpop.permute.xlu1 %657 }
 0x169   : > { %628 = vrot.lane.b32.xlu2 %v1796_v8, %s1545_s13 }
 0x171   : > { %659 = vrot.lane.b32.xlu2 %v1785_v5, %s1543_s11  ;;  %s1546_s11 = smov 16  }
 0x1b3   : > { %v617_v10 = vpop.permute.xlu2 %616 }
 0x1b4   : > { %v1806_v16 = vsel %vm607_vm8, %v617_v10, %v612_v4 }
 0x1b5   : > { %634 = vrot.lane.b32.xlu1 %v1806_v16, %s1545_s13 }
 0x1bb   : > { %v615_v19 = vpop.permute.xlu2 %614 }
 0x1bc   : > { %v1813_v20 = vsel %vm607_vm8, %v615_v19, %v609_v24  ;;  %v1322_v19 = vld [vmem:[%s2150_s3 + $0x60] sm:$0xff] }
 0x1bd   : > { %759 = vperm.xlu1 %1418, %v1316_v18   ;;  %630 = vrot.lane.b32.xlu0 %v1813_v20, %s1545_s13  ;;  %s293_s13 = sand.u32 1, %s1516_s25  }
 0x1be   : > { %s1297_s17 = sshll.u32 %s293_s13, 2  ;;  %s1194_s28 = scalar_lea.sflag [#allocation3], %s293_s13 }
 0x1bf   : > { %s295_s22 = scalar_lea.vmem [#allocation2], %s1297_s17 }
 0x1c3   : > { %v629_v28 = vpop.permute.xlu2 %628 }
 0x1c5   : > { %843 = vperm.xlu1 %1418, %v1321_v22   ;;  %799 = vperm.xlu0 %1417, %v1318_v17  }
 0x1cb   : > { %v660_v37 = vpop.permute.xlu2 %659  ;;  %v633_v44 = vpop.permute.xlu0 %632 }
 0x1cc   : > { %v663_v38 = vsel %vm661_vm9, %v658_v26, %v660_v37  ;;  %v671_v62 = vsel %vm1857_vm13, %v660_v37, 0.0  ;;  %v935_v26 = vld [vmem:[%s2151_s4] sm:$0xff] }
 0x1cd   : > { %693 = vperm.xlu1 %1418, %v685_v25   ;;  %705 = vperm.xlu0 %1417, %v1312_v15   ;;  %v1839_v39 = vsel %vm605_vm10, %v663_v38, 0.0  ;;  %v1327_v25 = vld [vmem:[%s2150_s3 + $0x88] sm:$0xff]  ;;  %v1324_v15 = vld [vmem:[%s2150_s3 + $0x70] sm:$0xff] }
 0x1d3   : > { %v656_v27 = vpop.permute.xlu1 %655 }
 0x1d4   : > { %v662_v34 = vsel %vm661_vm9, %v654_v21, %v656_v27  ;;  %v669_v12 = vsel %vm1857_vm13, %v656_v27, 0.0 }
 0x1d5   : > { %743 = vperm.xlu1 %1418, %v1315_v30   ;;  %v1832_v35 = vsel %vm605_vm10, %v662_v34, 0.0 }
 0x1d6   : > { %721 = vrot.lane.b32.xlu2 %v1832_v35, %s1544_s10 }
 0x1dd   : > { %724 = vrot.lane.b32.xlu1 %v1839_v39, %s1544_s10 }
 0x1de   : > { %804 = vperm.xlu2 %1419, %v1319_v32  }
 0x1e6   : > { %838 = vperm.xlu2 %1419, %v1320_v40  }
 0x1ee   : > { %710 = vperm.xlu2 %1419, %v1313_v41  }
 0x1f6   : > { %688 = vperm.xlu2 %1419, %v684_v42  }
 0x227   : > { %v635_v45 = vpop.permute.xlu1 %634 }
 0x228   : > { %v638_v46 = vsel %vm636_vm11, %v633_v44, %v635_v45  ;;  %v646_v6 = vsel %vm1861_vm14, %v635_v45, 0.0  ;;  %v1325_v44 = vld [vmem:[%s2150_s3 + $0x78] sm:$0xff]  ;;  %v1326_v45 = vld [vmem:[%s2150_s3 + $0x80] sm:$0xff] }
 0x229   : > { %v1852_v47 = vsel %vm603_vm12, %v638_v46, 0.0  ;;  %v770_v18 = vmul.f32 %v765_v43, %v646_v6 }
 0x22a   : > { %675 = vrot.lane.b32.xlu2 %v1852_v47, %s1544_s10 }
 0x22f   : > { %v631_v50 = vpop.permute.xlu0 %630  ;;  %v760_v9 = vpop.permute.xlu1 %759 }
 0x230   : > { %v637_v51 = vsel %vm636_vm11, %v629_v28, %v631_v50  ;;  %v1869_v52 = vsel %vm1861_vm14, %v631_v50, 0.0  ;;  %v1871_v53 = vpop.permute.xlu2 %721  ;;  %v936_v28 = vld [vmem:[%s2151_s4 + $0x8] sm:$0xff] }
 0x231   : > { %v1873_v14 = vsel %vm603_vm12, %v637_v51, 0.0  ;;  %v768_v54 = vmul.f32 %v760_v9, %v1869_v52  ;;  %v1878_v55 = vsel %vm607_vm8, %v1871_v53, %v669_v12 }
 0x232   : > { %672 = vrot.lane.b32.xlu0 %v1873_v14, %s1544_s10  ;;  %727 = vrot.lane.b32.xlu2 %v1878_v55, %s1544_s10  ;;  %v767_v63 = vmul.f32 %v760_v9, %v1873_v14 }
 0x233   : > { %777 = vrot.lane.b32.xlu1 %v768_v54, %s1546_s11 }
 0x237   : > { %v800_v31 = vpop.permute.xlu0 %799  ;;  %v844_v56 = vpop.permute.xlu1 %843 }
 0x238   : > { %v807_v58 = vmul.f32 %v800_v31, %v1747_v11  ;;  %v805_v59 = vpop.permute.xlu2 %804  ;;  %v808_v0 = vmul.f32 %v800_v31, %v1792_v7  ;;  %v849_v1 = vmul.f32 %v844_v56, %v671_v62  ;;  %v848_v24 = vmul.f32 %v844_v56, %v1839_v39 }
 0x239   : > { %v809_v60 = vmul.f32 %v805_v59, %v1762_v23  ;;  %v810_v4 = vmul.f32 %v805_v59, %v1775_v33  ;;  %v769_v33 = vmul.f32 %v765_v43, %v1852_v47 }
 0x23a   : > { %738 = vperm.xlu0 %1417, %v1314_v57  }
 0x23b   : > { %819 = vrot.lane.b32.xlu2 %v809_v60, %s1546_s11  ;;  %815 = vrot.lane.b32.xlu1 %v807_v58, %s1546_s11 }
 0x23f   : > { %v1892_v61 = vpop.permute.xlu1 %693  ;;  %v706_v40 = vpop.permute.xlu0 %705 }
 0x240   : > { %v839_v22 = vpop.permute.xlu2 %838 }
 0x241   : > { %v847_v17 = vmul.f32 %v839_v22, %v669_v12  ;;  %v846_v43 = vmul.f32 %v839_v22, %v1832_v35  ;;  %v713_v22 = vmul.f32 %v706_v40, %v1796_v8 }
 0x242   : > { %775 = vrot.lane.b32.xlu0 %v767_v63, %s1546_s11  ;;  %v714_v63 = vmul.f32 %v706_v40, %v1813_v20 }
 0x243   : > { %817 = vrot.lane.b32.xlu2 %v808_v0, %s1546_s11  ;;  %860 = vrot.lane.b32.xlu1 %v849_v1, %s1546_s11 }
 0x247   : > { %v1901_v2 = vpop.permute.xlu1 %743 }
 0x248   : > { %v711_v30 = vpop.permute.xlu2 %710 }
 0x249   : > { %v715_v37 = vmul.f32 %v711_v30, %v1785_v5 }
 0x24a   : > { %821 = vrot.lane.b32.xlu0 %v810_v4, %s1546_s11 }
 0x24b   : > { %882 = vperm.xlu2 %1419, %v1323_v36  }
 0x24f   : > { %v1910_v7 = vpop.permute.xlu1 %724 }
 0x250   : > { %v1915_v10 = vsel %vm607_vm8, %v1910_v7, %v671_v62  ;;  %v689_v21 = vpop.permute.xlu2 %688 }
 0x251   : > { %729 = vrot.lane.b32.xlu1 %v1915_v10, %s1544_s10  ;;  %v748_v1 = vmul.f32 %v1901_v2, %v1915_v10 }
 0x252   : > { %858 = vrot.lane.b32.xlu0 %v848_v24, %s1546_s11 }
 0x253   : > { %781 = vrot.lane.b32.xlu2 %v770_v18, %s1546_s11 }
 0x259   : > { %779 = vrot.lane.b32.xlu1 %v769_v33, %s1546_s11 }
 0x25b   : > { %877 = vperm.xlu2 %1419, %v1322_v19  }
 0x261   : > { %856 = vrot.lane.b32.xlu1 %v847_v17, %s1546_s11 }
 0x263   : > { %924 = vperm.xlu2 %1419, %v1327_v25  }
 0x269   : > { %898 = vperm.xlu1 %1418, %v1324_v15  }
 0x26b   : > { %939 = vperm.xlu2 %1419, %v935_v26  }
 0x271   : > { %944 = vperm.xlu1 %1418, %v936_v28  }
 0x273   : > { %1131 = vperm.xlu2 %1419, %v1128_v29  }
 0x284   : > { %v676_v27 = vpop.permute.xlu2 %675 }
 0x285   : > { %v1943_v34 = vsel %vm607_vm8, %v676_v27, %v646_v6  ;;  %v716_v6 = vmul.f32 %v711_v30, %v1806_v16 }
 0x286   : > { %v698_v38 = vmul.f32 %v1892_v61, %v1943_v34 }
 0x288   : > { %v719_v32 = vadd.f32 %v715_v37, %v698_v38 }
 0x28a   : > { %v752_v17 = vadd.f32 %v748_v1, %v719_v32 }
 0x28c   : > { %v728_v13 = vpop.permute.xlu2 %727 }
 0x28d   : > { %v731_v20 = vsel %vm607_vm8, %v728_v13, %v1871_v53 }
 0x295   : > { %v820_v9 = vpop.permute.xlu2 %819 }
 0x2a4   : > { %v673_v41 = vpop.permute.xlu0 %672 }
 0x2a5   : > { %v1950_v42 = vsel %vm607_vm8, %v673_v41, %v1869_v52  ;;  %v778_v46 = vpop.permute.xlu1 %777  ;;  %v818_v52 = vpop.permute.xlu2 %817 }
 0x2a6   : > { %678 = vrot.lane.b32.xlu0 %v1950_v42, %s1544_s10  ;;  %v696_v24 = vmul.f32 %v689_v21, %v1950_v42 }
 0x2a8   : > { %v717_v16 = vadd.f32 %v713_v22, %v696_v24 }
 0x2ac   : > { %v739_v48 = vpop.permute.xlu0 %738 }
 0x2ad   : > { %v816_v49 = vpop.permute.xlu1 %815  ;;  %v883_v56 = vpop.permute.xlu2 %882  ;;  %v746_v25 = vmul.f32 %v739_v48, %v1878_v55  ;;  %v747_v15 = vmul.f32 %v739_v48, %v731_v20 }
 0x2ae   : > { %680 = vrot.lane.b32.xlu0 %v1943_v34, %s1544_s10  ;;  %s1547_s10 = smov 96  }
 0x2b4   : > { %v776_v50 = vpop.permute.xlu0 %775 }
 0x2b5   : > { %v861_v12 = vpop.permute.xlu1 %860  ;;  %v782_v60 = vpop.permute.xlu2 %781  ;;  %v784_v53 = vsel %vm783_vm15, %v776_v50, %v778_v46 }
 0x2b6   : > { %854 = vrot.lane.b32.xlu0 %v846_v43, %s1546_s11 }
 0x2bc   : > { %v822_v51 = vpop.permute.xlu0 %821 }
 0x2bd   : > { %v878_v29 = vpop.permute.xlu2 %877  ;;  %v824_v32 = vsel %vm783_vm15, %v820_v9, %v822_v51  ;;  %v887_v51 = vmul.f32 %v883_v56, %v1852_v47 }
 0x2be   : > { %903 = vperm.xlu0 %1417, %v1325_v44   ;;  %v885_v1 = vmul.f32 %v878_v29, %v1873_v14 }
 0x2c3   : > { %v730_v54 = vpop.permute.xlu1 %729 }
 0x2c4   : > { %v859_v31 = vpop.permute.xlu0 %858  ;;  %v732_v4 = vsel %vm607_vm8, %v730_v54, %v1910_v7  ;;  %v823_v54 = vsel %vm783_vm15, %v816_v49, %v818_v52  ;;  %v886_v52 = vmul.f32 %v878_v29, %v1950_v42 }
 0x2c5   : > { %v749_v7 = vmul.f32 %v1901_v2, %v732_v4  ;;  %v863_v44 = vsel %vm783_vm15, %v859_v31, %v861_v12 }
 0x2c6   : > { %919 = vperm.xlu0 %1417, %v1326_v45   ;;  %v888_v45 = vmul.f32 %v883_v56, %v1943_v34 }
 0x2cb   : > { %v780_v57 = vpop.permute.xlu1 %779 }
 0x2cc   : > { %v792_v28 = vadd.f32 %v780_v57, %v752_v17 }
 0x2ce   : > { %v831_v40 = vadd.f32 %v820_v9, %v792_v28  ;;  %v925_v9 = vpop.permute.xlu2 %924 }
 0x2d3   : > { %v857_v18 = vpop.permute.xlu1 %856 }
 0x2db   : > { %v899_v48 = vpop.permute.xlu1 %898 }
 0x318   : > { %v679_v58 = vpop.permute.xlu0 %678 }
 0x319   : > { %v682_v59 = vsel %vm607_vm8, %v679_v58, %v673_v41 }
 0x31a   : > { %v697_v62 = vmul.f32 %v689_v21, %v682_v59 }
 0x31c   : > { %v718_v33 = vadd.f32 %v714_v63, %v697_v62 }
 0x31e   : > { %v751_v30 = vadd.f32 %v747_v15, %v718_v33  ;;  %v945_v33 = vpop.permute.xlu1 %944 }
 0x320   : > { %v681_v0 = vpop.permute.xlu0 %680  ;;  %v791_v43 = vadd.f32 %v784_v53, %v751_v30 }
 0x321   : > { %v683_v36 = vsel %vm607_vm8, %v681_v0, %v676_v27  ;;  %v750_v27 = vadd.f32 %v746_v25, %v717_v16 }
 0x322   : > { %v699_v19 = vmul.f32 %v1892_v61, %v683_v36  ;;  %v785_v61 = vsel %vm783_vm15, %v780_v57, %v782_v60  ;;  %v870_v57 = vadd.f32 %v859_v31, %v831_v40  ;;  %v830_v60 = vadd.f32 %v823_v54, %v791_v43 }
 0x323   : > { %v790_v41 = vadd.f32 %v776_v50, %v750_v27  ;;  %v929_v31 = vmul.f32 %v925_v9, %v1839_v39 }
 0x324   : > { %v720_v26 = vadd.f32 %v716_v6, %v699_v19  ;;  %v891_v0 = vadd.f32 %v887_v51, %v870_v57 }
 0x325   : > { %v829_v59 = vadd.f32 %v816_v49, %v790_v41  ;;  %v930_v49 = vmul.f32 %v925_v9, %v1915_v10 }
 0x326   : > { %v753_v21 = vadd.f32 %v749_v7, %v720_v26  ;;  %v940_v7 = vpop.permute.xlu2 %939 }
 0x328   : > { %v793_v37 = vadd.f32 %v785_v61, %v753_v21  ;;  %v855_v38 = vpop.permute.xlu0 %854 }
 0x329   : > { %v862_v58 = vsel %vm783_vm15, %v855_v38, %v857_v18  ;;  %v868_v50 = vadd.f32 %v855_v38, %v829_v59  ;;  %v906_v18 = vmul.f32 %v899_v48, %v1747_v11 }
 0x32a   : > { %v832_v2 = vadd.f32 %v824_v32, %v793_v37  ;;  %v869_v62 = vadd.f32 %v862_v58, %v830_v60 }
 0x32b   : > { %v889_v47 = vadd.f32 %v885_v1, %v868_v50 }
 0x32c   : > { %v871_v13 = vadd.f32 %v863_v44, %v832_v2  ;;  %v890_v56 = vadd.f32 %v886_v52, %v869_v62 }
 0x32d   : > { %v910_v19 = vadd.f32 %v906_v18, %v889_v47 }
 0x32e   : > { %v892_v46 = vadd.f32 %v888_v45, %v871_v13 }
 0x330   : > { %v904_v63 = vpop.permute.xlu0 %903 }
 0x331   : > { %v908_v12 = vmul.f32 %v904_v63, %v1762_v23  ;;  %v909_v34 = vmul.f32 %v904_v63, %v1785_v5  ;;  %v907_v23 = vmul.f32 %v899_v48, %v1796_v8 }
 0x333   : > { %v912_v4 = vadd.f32 %v908_v12, %v891_v0  ;;  %v913_v36 = vadd.f32 %v909_v34, %v892_v46  ;;  %v911_v39 = vadd.f32 %v907_v23, %v890_v56 }
 0x335   : > { %v933_v6 = vadd.f32 %v929_v31, %v912_v4  ;;  %v934_v24 = vadd.f32 %v930_v49, %v913_v36 }
 0x337   : > { %v1995_v5 = vadd.f32 %v945_v33, %v933_v6  ;;  %v1997_v14 = vadd.f32 %v945_v33, %v934_v24 }
 0x338   : > { %v920_v42 = vpop.permute.xlu0 %919 }
 0x339   : > { %v2000_v10 = vmul.f32 0.70710677, %v1995_v5  ;;  %v2003_v22 = vmul.f32 0.70710677, %v1997_v14  ;;  %v927_v20 = vmul.f32 %v920_v42, %v1832_v35  ;;  %v928_v11 = vmul.f32 %v920_v42, %v1878_v55 }
 0x33b   : > { %v1039_v8 = vmul.f32 %v2000_v10, %v2000_v10  ;;  %v1079_v17 = vmul.f32 %v2003_v22, %v2003_v22  ;;  %v931_v25 = vadd.f32 %v927_v20, %v910_v19  ;;  %v932_v15 = vadd.f32 %v928_v11, %v911_v39 }
 0x33d   : > { %v2011_v26 = vmin.f32 %v1039_v8, 16.0  ;;  %v2013_v28 = vmin.f32 %v1079_v17, 16.0  ;;  %v2015_v16 = vadd.f32 %v940_v7, %v931_v25  ;;  %v2017_v29 = vadd.f32 %v940_v7, %v932_v15 }
 0x33f   : > { %v2020_v35 = vmul.f32 0.70710677, %v2015_v16  ;;  %v2023_v55 = vmul.f32 0.70710677, %v2017_v29  ;;  %v1041_v30 = vmul.f32 2.1237322e-06, %v2011_v26 }
 0x340   : > { %v1052_v21 = vmul.f32 3.8918573e-05, %v2011_v26  ;;  %v1081_v61 = vmul.f32 2.1237322e-06, %v2013_v28  ;;  %v1092_v38 = vmul.f32 3.8918573e-05, %v2013_v28 }
 0x341   : > { %v959_v27 = vmul.f32 %v2020_v35, %v2020_v35  ;;  %v999_v37 = vmul.f32 %v2023_v55, %v2023_v55  ;;  %v1042_v53 = vadd.f32 0.00028619796, %v1041_v30 }
 0x342   : > { %v1053_v32 = vadd.f32 0.001143296, %v1052_v21  ;;  %v1082_v40 = vadd.f32 0.00028619796, %v1081_v61  ;;  %v1093_v2 = vadd.f32 0.001143296, %v1092_v38 }
 0x343   : > { %v2033_v41 = vmin.f32 %v959_v27, 16.0  ;;  %v2035_v43 = vmin.f32 %v999_v37, 16.0  ;;  %v1043_v44 = vmul.f32 %v1042_v53, %v2011_v26 }
 0x344   : > { %v1054_v45 = vmul.f32 %v1053_v32, %v2011_v26  ;;  %v1083_v48 = vmul.f32 %v1082_v40, %v2013_v28  ;;  %v1094_v57 = vmul.f32 %v1093_v2, %v2013_v28 }
 0x345   : > { %v961_v13 = vmul.f32 2.1237322e-06, %v2033_v41  ;;  %v1001_v54 = vmul.f32 2.1237322e-06, %v2035_v43  ;;  %v972_v58 = vmul.f32 3.8918573e-05, %v2033_v41 }
 0x346   : > { %v1044_v59 = vadd.f32 0.0036580483, %v1043_v44  ;;  %v1055_v60 = vadd.f32 0.014752088, %v1054_v45  ;;  %v1084_v46 = vadd.f32 0.0036580483, %v1083_v48 }
 0x347   : > { %v1095_v51 = vadd.f32 0.014752088, %v1094_v57  ;;  %v962_v9 = vadd.f32 0.00028619796, %v961_v13  ;;  %v973_v62 = vadd.f32 0.001143296, %v972_v58 }
 0x348   : > { %v1056_v50 = vmul.f32 %v1055_v60, %v2011_v26  ;;  %v1002_v63 = vadd.f32 0.00028619796, %v1001_v54  ;;  %v1045_v0 = vmul.f32 %v1044_v59, %v2011_v26  ;;  %v1012_v34 = vmul.f32 3.8918573e-05, %v2035_v43 }
 0x349   : > { %v1096_v12 = vmul.f32 %v1095_v51, %v2013_v28  ;;  %v1085_v52 = vmul.f32 %v1084_v46, %v2013_v28  ;;  %v974_v31 = vmul.f32 %v973_v62, %v2033_v41  ;;  %v963_v4 = vmul.f32 %v962_v9, %v2033_v41 }
 0x34a   : > { %v1057_v1 = vadd.f32 0.112945676, %v1056_v50  ;;  %v1003_v56 = vmul.f32 %v1002_v63, %v2035_v43  ;;  %v1046_v6 = vadd.f32 0.05243302, %v1045_v0  ;;  %v1013_v18 = vadd.f32 0.001143296, %v1012_v34 }
 0x34b   : > { %v1097_v49 = vadd.f32 0.112945676, %v1096_v12  ;;  %v975_v47 = vadd.f32 0.014752088, %v974_v31  ;;  %v1086_v33 = vadd.f32 0.05243302, %v1085_v52 }
 0x34c   : > { %v1058_v36 = vmul.f32 %v1057_v1, %v2011_v26  ;;  %v1014_v39 = vmul.f32 %v1013_v18, %v2035_v43  ;;  %v964_v20 = vadd.f32 0.0036580483, %v963_v4  ;;  %v1004_v17 = vadd.f32 0.0036580483, %v1003_v56 }
 0x34d   : > { %v1098_v24 = vmul.f32 %v1097_v49, %v2013_v28  ;;  %v976_v42 = vmul.f32 %v975_v47, %v2033_v41  ;;  %v1047_v25 = vmul.f32 %v1046_v6, %v2011_v26  ;;  %v1087_v21 = vmul.f32 %v1086_v33, %v2013_v28 }
 0x34e   : > { %v1059_v23 = vadd.f32 0.4994258, %v1058_v36  ;;  %v1015_v7 = vadd.f32 0.014752088, %v1014_v39  ;;  %v965_v27 = vmul.f32 %v964_v20, %v2033_v41  ;;  %v1005_v53 = vmul.f32 %v1004_v17, %v2035_v43 }
 0x34f   : > { %v1099_v19 = vadd.f32 0.4994258, %v1098_v24  ;;  %v977_v8 = vadd.f32 0.112945676, %v976_v42  ;;  %v1048_v32 = vadd.f32 0.18741608, %v1047_v25 }
 0x350   : > { %v1060_v11 = vmul.f32 %v1059_v23, %v2011_v26  ;;  %v1016_v38 = vmul.f32 %v1015_v7, %v2035_v43  ;;  %v1088_v40 = vadd.f32 0.18741608, %v1087_v21  ;;  %v966_v2 = vadd.f32 0.05243302, %v965_v27 }
 0x351   : > { %v1100_v15 = vmul.f32 %v1099_v19, %v2013_v28  ;;  %v978_v37 = vmul.f32 %v977_v8, %v2033_v41  ;;  %v1006_v48 = vadd.f32 0.05243302, %v1005_v53  ;;  %v1049_v13 = vmul.f32 %v1048_v32, %v2011_v26 }
 0x352   : > { %v1061_v30 = vadd.f32 1.0, %v1060_v11  ;;  %v1017_v45 = vadd.f32 0.112945676, %v1016_v38  ;;  %v1089_v57 = vmul.f32 %v1088_v40, %v2013_v28  ;;  %v967_v51 = vmul.f32 %v966_v2, %v2033_v41 }
 0x353   : > { %v1101_v61 = vadd.f32 1.0, %v1100_v15  ;;  %v979_v44 = vadd.f32 0.4994258, %v978_v37  ;;  %v1007_v62 = vmul.f32 %v1006_v48, %v2035_v43  ;;  %v1050_v63 = vadd.f32 1.1283791, %v1049_v13 }
 0x354   : > { %1438 = vrcp.f32 %v1061_v30  ;;  %v1018_v59 = vmul.f32 %v1017_v45, %v2035_v43  ;;  %v1071_v26 = vand.u32 2147483647, %v1061_v30  ;;  %v1073_v34 = vand.u32 2147483648, %v1061_v30 }
 0x355   : > { %1440 = vrcp.f32 %v1101_v61  ;;  %v980_v58 = vmul.f32 %v979_v44, %v2033_v41  ;;  %v1090_v1 = vadd.f32 1.1283791, %v1089_v57  ;;  %v968_v49 = vadd.f32 0.18741608, %v967_v51 }
 0x356   : > { %v1019_v50 = vadd.f32 0.4994258, %v1018_v59  ;;  %vm1067_vm1 = vweird.f32 %v1061_v30  ;;  %v1111_v4 = vand.u32 2147483647, %v1101_v61  ;;  %v1113_v36 = vand.u32 2147483648, %v1101_v61 }
 0x357   : > { %v2069_v9 = vadd.f32 1.0, %v980_v58  ;;  %v1008_v24 = vadd.f32 0.18741608, %v1007_v62  ;;  %v1051_v18 = vmul.f32 %v1050_v63, %v2000_v10  ;;  %vm1072_vm4 = vcmp.eq.f32.partialorder %v1071_v26, 8.507059e+37 }
 0x358   : > { %v1020_v31 = vmul.f32 %v1019_v50, %v2035_v43  ;;  %v1074_v23 = vor.u32 1.1754944e-38, %v1073_v34  ;;  %vm1107_vm5 = vweird.f32 %v1101_v61  ;;  %v969_v39 = vmul.f32 %v968_v49, %v2033_v41 }
 0x359   : > { %1442 = vrcp.f32 %v2069_v9  ;;  %v1091_v11 = vmul.f32 %v1090_v1, %v2003_v22  ;;  %v1114_v8 = vor.u32 1.1754944e-38, %v1113_v36  ;;  %vm1112_vm7 = vcmp.eq.f32.partialorder %v1111_v4, 8.507059e+37 }
 0x35a   : > { %v1439_v54 = vpop.eup %1438  ;;  %v2074_v6 = vadd.f32 1.0, %v1020_v31  ;;  %v953_v7 = vmul.f32 0.5, %v1995_v5  ;;  %v970_v27 = vadd.f32 1.1283791, %v969_v39  ;;  %v1009_v41 = vmul.f32 %v1008_v24, %v2035_v43 }
 0x35b   : > { %v1063_v60 = vmul.f32 %v1439_v54, %v1061_v30  ;;  %v1441_v46 = vpop.eup %1440  ;;  %vm1068_vm0 = vweird.f32 %v1439_v54  ;;  %v991_v37 = vand.u32 2147483647, %v2069_v9  ;;  %v993_v22 = vand.u32 2147483648, %v2069_v9 }
 0x35c   : > { %v1103_v12 = vmul.f32 %v1441_v46, %v1101_v61  ;;  %vm1108_vm2 = vweird.f32 %v1441_v46  ;;  %vm1069_vm3 = vmor %vm1067_vm1, %vm1068_vm0  ;;  %1444 = vrcp.f32 %v2074_v6  ;;  %v954_v2 = vmul.f32 0.5, %v1997_v14 }
 0x35d   : > { %v1064_v0 = vsub.f32 1.0, %v1063_v60  ;;  %vm1109_vm6 = vmor %vm1107_vm5, %vm1108_vm2  ;;  %vm987_vm9 = vweird.f32 %v2069_v9  ;;  %v971_v43 = vmul.f32 %v970_v27, %v2020_v35  ;;  %v1010_v13 = vadd.f32 1.1283791, %v1009_v41 }
 0x35e   : > { %v1104_v52 = vsub.f32 1.0, %v1103_v12  ;;  %vm992_vm11 = vcmp.eq.f32.partialorder %v991_v37, 8.507059e+37  ;;  %v1033_v60 = vand.u32 2147483648, %v2074_v6  ;;  %v1031_v51 = vand.u32 2147483647, %v2074_v6 }
 0x35f   : > { %v1065_v28 = vmul.f32 %v1439_v54, %v1064_v0  ;;  %v1443_v19 = vpop.eup %1442  ;;  %vm1027_vm13 = vweird.f32 %v2074_v6  ;;  %v1011_v0 = vmul.f32 %v1010_v13, %v2023_v55  ;;  %v952_v31 = vmul.f32 0.5, %v2017_v29  ;;  %v1132_v29 = vpop.permute.xlu2 %1131 }
 0x360   : > { %v1105_v56 = vmul.f32 %v1441_v46, %v1104_v52  ;;  %v983_v10 = vmul.f32 %v1443_v19, %v2069_v9  ;;  %vm988_vm8 = vweird.f32 %v1443_v19  ;;  %v1034_v9 = vor.u32 1.1754944e-38, %v1033_v60 }
 0x361   : > { %v1066_v47 = vadd.f32 %v1439_v54, %v1065_v28  ;;  %vm989_vm10 = vmor %vm987_vm9, %vm988_vm8  ;;  %vm1032_vm0 = vcmp.eq.f32.partialorder %v1031_v51, 8.507059e+37  ;;  %v951_v28 = vmul.f32 0.5, %v2015_v16  ;;  %vm1146_vm1 = vcmask 785408   ;;  %v1127_v16 = vld [vmem:[%s2152_s5] sm:$0xf] }
 0x362   : > { %v1106_v42 = vadd.f32 %v1441_v46, %v1105_v56  ;;  %v984_v61 = vsub.f32 1.0, %v983_v10  ;;  %v1445_v38 = vpop.eup %1444 }
 0x363   : > { %v1070_v33 = vsel %vm1069_vm3, %v1439_v54, %v1066_v47  ;;  %v1023_v44 = vmul.f32 %v1445_v38, %v2074_v6  ;;  %v994_v54 = vor.u32 1.1754944e-38, %v993_v22  ;;  %vm1028_vm12 = vweird.f32 %v1445_v38 }
 0x364   : > { %v1075_v20 = vsel %vm1072_vm4, %v1074_v23, %v1070_v33  ;;  %v1110_v25 = vsel %vm1109_vm6, %v1441_v46, %v1106_v42  ;;  %v985_v40 = vmul.f32 %v1443_v19, %v984_v61  ;;  %vm1029_vm14 = vmor %vm1027_vm13, %vm1028_vm12 }
 0x365   : > { %v1076_v17 = vmul.f32 %v1075_v20, %v1051_v18  ;;  %v1115_v15 = vsel %vm1112_vm7, %v1114_v8, %v1110_v25  ;;  %v1024_v57 = vsub.f32 1.0, %v1023_v44 }
 0x366   : > { %v1116_v21 = vmul.f32 %v1115_v15, %v1091_v11  ;;  %v986_v48 = vadd.f32 %v1443_v19, %v985_v40 }
 0x367   : > { %v1330_v30 = vclamps-f32 %v1076_v17, 1.0  ;;  %v1025_v14 = vmul.f32 %v1445_v38, %v1024_v57 }
 0x368   : > { %v1331_v53 = vclamps-f32 %v1116_v21, 1.0  ;;  %v990_v59 = vsel %vm989_vm10, %v1443_v19, %v986_v48 }
 0x369   : > { %v1121_v32 = vadd.f32 1.0, %v1330_v30  ;;  %v995_v46 = vsel %vm992_vm11, %v994_v54, %v990_v59  ;;  %v1026_v63 = vadd.f32 %v1445_v38, %v1025_v14 }
 0x36a   : > { %v1122_v5 = vadd.f32 1.0, %v1331_v53  ;;  %v996_v62 = vmul.f32 %v995_v46, %v971_v43 }
 0x36b   : > { %v1125_v45 = vmul.f32 %v1121_v32, %v953_v7  ;;  %v1030_v12 = vsel %vm1029_vm14, %v1445_v38, %v1026_v63 }
 0x36c   : > { %v1126_v58 = vmul.f32 %v1122_v5, %v954_v2  ;;  %v1328_v35 = vclamps-f32 %v996_v62, 1.0  ;;  %v1035_v26 = vsel %vm1032_vm0, %v1034_v9, %v1030_v12 }
 0x36d   : > { %v1036_v34 = vmul.f32 %v1035_v26, %v1011_v0 }
 0x36e   : > { %v1420_v50 = vpack.i.bf16 %v1126_v58, %v1125_v45  ;;  %v1119_v1 = vadd.f32 1.0, %v1328_v35 }
 0x36f   : > { %v1329_v52 = vclamps-f32 %v1036_v34, 1.0 }
 0x370   : > { %1421 = vrot.lane.b32.xlu0 %v1420_v50, %s1547_s10  ;;  %v1123_v4 = vmul.f32 %v1119_v1, %v951_v28 }
 0x371   : > { %v1120_v49 = vadd.f32 1.0, %v1329_v52 }
 0x373   : > { %v1124_v36 = vmul.f32 %v1120_v49, %v952_v31 }
 0x375   : > { %v1425_v47 = vpack.i.bf16 %v1124_v36, %v1123_v4 }
 0x377   : > { %1426 = vrot.lane.b32.xlu1 %v1425_v47, %s1547_s10  ;;  %s1208_s10 = sshll.u32 %s295_s22, 4  ;;  %s1209_s10 = int_to_ptr.vmem [resolvable:$true] %s1208_s10 }
 0x3e2   : > { %v1422_v56 = vpop.permute.xlu0 %1421 }
 0x3e3   : > { %v1424_v6 = vunpack.i.h.bf16 %v1422_v56  ;;  %v1423_v24 = vunpack.i.l.bf16 %v1422_v56 }
 0x3e5   : > { %v1148_v55 = vsel %vm1146_vm1, %v1423_v24, %v1424_v6 }
 0x3e6   : > { %1168 = vmatpush.msra.mxu2 %v1148_v55 }
 0x3e9   : > { %v1427_v18 = vpop.permute.xlu1 %1426 }
 0x3ea   : > { %v1429_v23 = vunpack.i.h.bf16 %v1427_v18  ;;  %v1428_v33 = vunpack.i.l.bf16 %v1427_v18 }
 0x3ec   : > { %v1147_v42 = vsel %vm1146_vm1, %v1428_v33, %v1429_v23 }
 0x3ed   : > { %1169 = vmatpush.msra.mxu2 %v1147_v42 }
 0x3ee   : > { %1332 = vmatmul.msk.f32.vlgmr.msra.gmra.mxu2 %vm783_vm15, %v1127_v16 }
 0x471   : > { %v1171_v19 = vpop.f32.mrf.mxu2 }
 0x472   : > { %v1172_v39 = vadd.f32 %v1171_v19, %v1132_v29 }
 0x474   : > { %1175 = vrot.lane.b32.xlu0 %v1172_v39, %s1546_s11  ;;  %s1206_s11 = scalar_lea.hbm %s2154_s7, %s1335_s18 }
 0x475   : > { %s1210_s23 = sshll.u32 %s1206_s11, 4  ;;  %s1211_s23 = int_to_ptr.hbm [resolvable:$true] %s1210_s23 }
 0x476   : > { %s1460_s30 = sshra.s32 %s1211_s23, 4  ;;  %s1461_s30 = int_to_ptr.hbm [resolvable:$true] %s1460_s30 }
 0x477   : > { %s1462_s27 = scalar_lea.hbm %s1461_s30, 4  ;;  %p1467_p4 = scmp.lt.s32.totalorder %s1461_s30, %s2154_s7 }
 0x478   : > { %p1463_p0 = scmp.ne.s32.totalorder %s1461_s30, %s1462_s27  ;;  %p1468_p5 = scmp.lt.s32.totalorder %s1466_s16, %s1462_s27 }
 0x47a   : > { %p1464_p1 = pnand %p1463_p0, %p1640_p3  ;;  %p1469_p6 = por %p1468_p5, %p1467_p4 }
 0x47c   : > { %p1465_p2 = pneg %p1464_p1 }
 0x47e   : > { %p1470_p7 = pnand %p1469_p6, %p1465_p2 }
 0x4e6   : > { %v1176_v20 = vpop.permute.xlu0 %1175 }
 0x4e7   : > { %v1177_v11 = vrot.slane %v1176_v20, 4 }
 0x4e9   : > { %v1178_v8 = vsel %vm783_vm15, %v1177_v11, %v1176_v20  ;;  %vm1189_vm15 = vcmask 916480  }
 0x4ea   : > { %v1180_v17 = vadd.f32 %v1178_v8, %v1673_v3 }
 0x4ec   : > { %1182 = vst [vmem:[#allocation1] ss:$2 sm:$0xff] %v1180_v17 }
 0x4f3   : > { %v1184_v25 = vld.sshfl [vmem:[#allocation1 + $0x8] sm:$0xff pattern:$0x75316420]  ;;  %v1183_v10 = vld.sshfl [vmem:[#allocation1] sm:$0xff pattern:$0x75316420] }
 0x4f4   : > { %1187 = vrot.lane.b32.xlu2 %v1184_v25, %s1548_s12  ;;  %1185 = vrot.lane.b32.xlu1 %v1183_v10, %s1548_s12 }
 0x54e   : > { %v1188_v3 = vpop.permute.xlu2 %1187 }
 0x566   : > { %v1186_v15 = vpop.permute.xlu1 %1185 }
 0x567   : > { %v1190_v7 = vsel %vm1189_vm15, %v1186_v15, %v1188_v3 }
 0x568   : > { %1192 = vst [vmem:[%s295_s22] sm:$0xf] %v1190_v7 }
 0x569   : > { %1473 = shalt.err (!%p1470_p7)
}
 0x56a   : > { %1339 = dma.vmem_to_hbm [thread:$0]  (%p1640_p3), %s1209_s10, 64, %s1211_s23, %s1194_s28  }
 0x56b PF: > { %p1345_p9 = scmp.ge.s32.totalorder %s1540_s8, 2  ;;  %s1222_s13 = sand.u32 1, %s1512_s24  }
 0x56c   : > { %s1223_s20 = scalar_lea.sflag [#allocation3], %s1222_s13 }
 0x56d   : > { %p1342_p10 = pnand %p1345_p9, %p1649_p8 }
 0x56f   : > { %p1343_p11 = pneg %p1342_p10 }
 0x571   : > { %1507 = dma.done.wait (%p1343_p11), %s1223_s20, 64  }
 0x572   : > { %1509 = vsyncadd (%p1343_p11), %s1223_s20, 4294967232  ;;  %s20_s8 = sadd.s32 1, %s1540_s8   ;;  %s2171_s28 = sld [smem:[#allocation5_spill]] }
 0x573   : > { %p17_p12 = scmp.ge.s32.totalorder %s20_s8, 6   ;;  %s2172_s14 = sld [smem:[#allocation6_spill]] }
 0x574   : > { %s2173_s30 = sld [smem:[#allocation7_spill]]  ;;  %s2174_s24 = smov %s1516_s25 }
 0x575   : > { %s2175_s25 = smov %s1520_s26  ;;  %s2176_s26 = smov %s1658_s19 }
 0x576   : > { %s2177_s27 = smov %s1532_s29  ;;  %19 = sbr.rel (!%p17_p12) target bundleno = 5 (0x5), region = 91 }
 0x579   : > { %s2178_s29 = smov %s2172_s14 }
 0x57b   :  { %1229 = vsyncpa [#allocation3], 1 }
 0x57c   :  { %1231 = vsyncpa [#allocation3 + $0x1], 1 }

</bundles_post_ra>
